<compile_context>
chip_gen: v5e
topology: v5e:2x2
jax: 0.10.0
libtpu: 0.0.40
codegen_flags: <defaults>
</compile_context>

<pallas_src>
import functools

import jax
import jax.numpy as jnp
from jax.experimental import pallas as pl
from jax.experimental.pallas import tpu as pltpu

STATE_DIM = 64
IN_DIM = 2 * STATE_DIM   # 128
H1 = 512
H2 = 512
H3 = 128
A_DIM = 2
OUT_PAD = 128            # lane-dense padded width of the last matmul (>= A_DIM, mult of 128)


def _invdyn_kernel(x_ref, w1_ref, b1_ref, w2_ref, b2_ref,
                   w3_ref, b3_ref, w4_ref, b4_ref, o_ref):
    cdt = w1_ref.dtype  # compute dtype fed to the MXU (bf16 or f32)

    # In-kernel cast: x arrives from HBM as f32 (single pass, clean (8,128) tiling on
    # all generations) and is cast to the MXU dtype here instead of in the wrapper.
    x = x_ref[...].astype(cdt)

    # Layers 1-3: Linear + ReLU, f32 accumulation on the MXU, f32 biases.
    h = jnp.dot(x, w1_ref[...], preferred_element_type=jnp.float32)
    h = jnp.maximum(h + b1_ref[...], 0.0).astype(cdt)
    h = jnp.dot(h, w2_ref[...], preferred_element_type=jnp.float32)
    h = jnp.maximum(h + b2_ref[...], 0.0).astype(cdt)
    h = jnp.dot(h, w3_ref[...], preferred_element_type=jnp.float32)
    h = jnp.maximum(h + b3_ref[...], 0.0).astype(cdt)

    # Layer 4: Linear(128 -> OUT_PAD) + softmax over lanes.  Columns >= A_DIM of w4
    # are zero and their bias is -1e9, so those lanes underflow to 0 under exp() and
    # the 128-lane softmax equals the softmax over the first A_DIM lanes, keeping all
    # vector work lane-dense right up to the final store.
    logits = jnp.dot(h, w4_ref[...], preferred_element_type=jnp.float32) + b4_ref[...]
    m = jnp.max(logits, axis=-1, keepdims=True)
    e = jnp.exp(logits - m)
    probs = e * pl.reciprocal(jnp.sum(e, axis=-1, keepdims=True), approx=True)

    # Store only the real a_dim lanes (narrow masked store; the kernel is MXU-bound so
    # it hides).  This removes the post-kernel out[:, :A_DIM] slice pass over HBM.
    o_ref[...] = probs[:, :A_DIM].astype(o_ref.dtype)


def prepare_params(params, use_bf16=True):
    """One-time weight prep: pad layer 4 to a lane-dense width and cast weights for the
    MXU.  Call once and reuse across forward calls so the per-call hot path carries no
    weight-reformatting XLA kernels (biases stay f32: added to the f32 accumulator)."""
    w1, b1, w2, b2, w3, b3, w4, b4 = params
    w4p = jnp.pad(w4, ((0, 0), (0, OUT_PAD - A_DIM)))
    b4p = jnp.pad(b4, ((0, 0), (0, OUT_PAD - A_DIM)), constant_values=-1e9)
    cdt = jnp.bfloat16 if use_bf16 else jnp.float32
    return (w1.astype(cdt), b1, w2.astype(cdt), b2,
            w3.astype(cdt), b3, w4p.astype(cdt), b4p)


@functools.partial(jax.jit, static_argnames=("tile_m",))
def inverse_dynamics_forward(x, prepared_params, tile_m=1024):
    """x: (B, T, 2*state_dim) float32 -> softmax probs (B, T, a_dim) float32.

    prepared_params: output of prepare_params(...).
    tile_m: rows per grid step.  Default 1024 amortizes the ~0.35 us per-step pipeline
            overhead (multiple of 256 for v6e/v7x MXUs, of 128 for v5e); 2048 is also
            fine on v6e/v7x.  VMEM use at tile=1024 is ~10-15 MiB, well under the
            explicit 48 MiB limit below (and under v7x's 64 MiB physical VMEM).  For
            best v7x throughput keep N // tile_m >= 2 (ideally even) so both
            TensorCores get balanced work from the "parallel" grid axis.
    """
    w1, b1, w2, b2, w3, b3, w4, b4 = prepared_params
    B, T, D = x.shape
    assert D == IN_DIM
    N = B * T
    x2 = x.reshape(N, D)   # stays f32; cast to the MXU dtype inside the kernel

    # Clamp the tile for tiny inputs (multiple of 8 sublanes for the f32 input block).
    tile = min(tile_m, max(8, ((N + 7) // 8) * 8))
    grid = (pl.cdiv(N, tile),)  # ragged last block instead of padding x in HBM

    full = lambda i: (0, 0)  # grid-invariant block: weights/biases stay VMEM-resident

    weight_bytes = (w1.size * w1.dtype.itemsize + w2.size * w2.dtype.itemsize +
                    w3.size * w3.dtype.itemsize + w4.size * w4.dtype.itemsize +
                    (b1.size + b2.size + b3.size + b4.size) * 4)
    cost = pl.CostEstimate(
        flops=2 * N * (IN_DIM * H1 + H1 * H2 + H2 * H3 + H3 * OUT_PAD),
        transcendentals=N * (OUT_PAD + 1),
        bytes_accessed=N * (IN_DIM * 4 + A_DIM * 4) + weight_bytes,
    )

    out = pl.pallas_call(
        _invdyn_kernel,
        out_shape=jax.ShapeDtypeStruct((N, A_DIM), jnp.float32),
        grid=grid,
        in_specs=[
            pl.BlockSpec((tile, IN_DIM), lambda i: (i, 0)),
            pl.BlockSpec((IN_DIM, H1), full),
            pl.BlockSpec((1, H1), full),
            pl.BlockSpec((H1, H2), full),
            pl.BlockSpec((1, H2), full),
            pl.BlockSpec((H2, H3), full),
            pl.BlockSpec((1, H3), full),
            pl.BlockSpec((H3, OUT_PAD), full),
            pl.BlockSpec((1, OUT_PAD), full),
        ],
        out_specs=pl.BlockSpec((tile, A_DIM), lambda i: (i, 0)),
        compiler_params=pltpu.CompilerParams(
            dimension_semantics=("parallel",),
            vmem_limit_bytes=48 * 1024 * 1024,
        ),
        cost_estimate=cost,
    )(x2, w1, b1, w2, b2, w3, b3, w4, b4)

    return out.reshape(B, T, A_DIM)


def init_params(key):
    """Deterministic init mimicking PyTorch Linear default (uniform +/- 1/sqrt(fan_in))."""
    dims = [(IN_DIM, H1), (H1, H2), (H2, H3), (H3, A_DIM)]
    params = []
    keys = jax.random.split(key, 2 * len(dims))
    for li, (fin, fout) in enumerate(dims):
        bound = 1.0 / jnp.sqrt(jnp.float32(fin))
        w = jax.random.uniform(keys[2 * li], (fin, fout), jnp.float32, -bound, bound)
        b = jax.random.uniform(keys[2 * li + 1], (1, fout), jnp.float32, -bound, bound)
        params += [w, b]
    return tuple(params)


def _reference(x, params):
    w1, b1, w2, b2, w3, b3, w4, b4 = params
    h = jnp.maximum(x @ w1 + b1, 0.0)
    h = jnp.maximum(h @ w2 + b2, 0.0)
    h = jnp.maximum(h @ w3 + b3, 0.0)
    logits = h @ w4 + b4
    return jax.nn.softmax(logits, axis=-1)


if __name__ == "__main__":
    key = jax.random.PRNGKey(0)
    kp, kx = jax.random.split(key)
    params = init_params(kp)

    B, T = 2, 8
    x = jax.random.normal(kx, (B, T, IN_DIM), dtype=jnp.float32)
    ref = _reference(x, params)

    # f32 path (approx reciprocal limits precision to ~1e-4 relative).
    prep_f32 = prepare_params(params, use_bf16=False)
    out_f32 = jax.block_until_ready(inverse_dynamics_forward(x, prep_f32))
    assert out_f32.shape == (B, T, A_DIM)
    assert jnp.allclose(out_f32, ref, atol=2e-3, rtol=2e-3)

    # Default bf16 path (native-rate MXU); looser tolerance for bf16 matmul inputs.
    prep_bf16 = prepare_params(params, use_bf16=True)
    out_bf16 = jax.block_until_ready(inverse_dynamics_forward(x, prep_bf16))
    assert out_bf16.shape == (B, T, A_DIM)
    assert jnp.allclose(out_bf16, ref, atol=5e-2, rtol=5e-2)

    # TODO(synk): get_losses / nn.CrossEntropyLoss is a training-time utility, not
    # part of the forward pass, and is not implemented as a kernel.
    print("KERNEL_OK")
</pallas_src>

<mosaic_0001>
module attributes {stable_mosaic.version = 11 : i64} {
  func.func @_invdyn_kernel(%arg0: i32, %arg1: memref<16x128xf32, #tpu.memory_space<vmem>>, %arg2: memref<128x512xf32, #tpu.memory_space<vmem>>, %arg3: memref<1x512xf32, #tpu.memory_space<vmem>>, %arg4: memref<512x512xf32, #tpu.memory_space<vmem>>, %arg5: memref<1x512xf32, #tpu.memory_space<vmem>>, %arg6: memref<512x128xf32, #tpu.memory_space<vmem>>, %arg7: memref<1x128xf32, #tpu.memory_space<vmem>>, %arg8: memref<128x128xf32, #tpu.memory_space<vmem>>, %arg9: memref<1x128xf32, #tpu.memory_space<vmem>>, %arg10: memref<16x2xf32, #tpu.memory_space<vmem>>) attributes {dimension_semantics = [#tpu.dimension_semantics<parallel>], iteration_bounds = array<i64: 1>, scalar_prefetch = 0 : i64, scratch_operands = 0 : i64, tpu.core_type = #tpu.core_type<tc>, window_params = [{transform_indices = @transform_0, window_bounds = array<i64: 16, 128>}, {pipeline_mode = #tpu.pipeline_mode<synchronous>, transform_indices = @transform_1, window_bounds = array<i64: 128, 512>}, {pipeline_mode = #tpu.pipeline_mode<synchronous>, transform_indices = @transform_2, window_bounds = array<i64: 1, 512>}, {pipeline_mode = #tpu.pipeline_mode<synchronous>, transform_indices = @transform_3, window_bounds = array<i64: 512, 512>}, {pipeline_mode = #tpu.pipeline_mode<synchronous>, transform_indices = @transform_4, window_bounds = array<i64: 1, 512>}, {pipeline_mode = #tpu.pipeline_mode<synchronous>, transform_indices = @transform_5, window_bounds = array<i64: 512, 128>}, {pipeline_mode = #tpu.pipeline_mode<synchronous>, transform_indices = @transform_6, window_bounds = array<i64: 1, 128>}, {pipeline_mode = #tpu.pipeline_mode<synchronous>, transform_indices = @transform_7, window_bounds = array<i64: 128, 128>}, {pipeline_mode = #tpu.pipeline_mode<synchronous>, transform_indices = @transform_8, window_bounds = array<i64: 1, 128>}, {transform_indices = @transform_9, window_bounds = array<i64: 16, 2>}]} {
    %c0 = arith.constant 0 : index
    %c0_0 = arith.constant 0 : index
    %0 = vector.load %arg1[%c0, %c0_0] : memref<16x128xf32, #tpu.memory_space<vmem>>, vector<16x128xf32>
    %c0_1 = arith.constant 0 : index
    %c0_2 = arith.constant 0 : index
    %1 = vector.load %arg2[%c0_1, %c0_2] : memref<128x512xf32, #tpu.memory_space<vmem>>, vector<128x512xf32>
    %cst = arith.constant dense<0.000000e+00> : vector<16x512xf32>
    %2 = tpu.matmul %0, %1, %cst {dimension_numbers = #tpu.dot_dimension_numbers<[1], [0], [0], [1], [0, 0, 1, 1], [], []>} : vector<16x128xf32>, vector<128x512xf32>, vector<16x512xf32> -> vector<16x512xf32>
    %c0_3 = arith.constant 0 : index
    %c0_4 = arith.constant 0 : index
    %3 = vector.load %arg3[%c0_3, %c0_4] : memref<1x512xf32, #tpu.memory_space<vmem>>, vector<1x512xf32>
    %4 = vector.broadcast %3 : vector<1x512xf32> to vector<16x512xf32>
    %5 = arith.addf %2, %4 : vector<16x512xf32>
    %cst_5 = arith.constant 0.000000e+00 : f32
    %6 = vector.broadcast %cst_5 : f32 to vector<16x512xf32>
    %7 = arith.maximumf %5, %6 : vector<16x512xf32>
    %c0_6 = arith.constant 0 : index
    %c0_7 = arith.constant 0 : index
    %8 = vector.load %arg4[%c0_6, %c0_7] : memref<512x512xf32, #tpu.memory_space<vmem>>, vector<512x512xf32>
    %cst_8 = arith.constant dense<0.000000e+00> : vector<16x512xf32>
    %9 = tpu.matmul %7, %8, %cst_8 {dimension_numbers = #tpu.dot_dimension_numbers<[1], [0], [0], [1], [0, 0, 1, 1], [], []>} : vector<16x512xf32>, vector<512x512xf32>, vector<16x512xf32> -> vector<16x512xf32>
    %c0_9 = arith.constant 0 : index
    %c0_10 = arith.constant 0 : index
    %10 = vector.load %arg5[%c0_9, %c0_10] : memref<1x512xf32, #tpu.memory_space<vmem>>, vector<1x512xf32>
    %11 = vector.broadcast %10 : vector<1x512xf32> to vector<16x512xf32>
    %12 = arith.addf %9, %11 : vector<16x512xf32>
    %cst_11 = arith.constant 0.000000e+00 : f32
    %13 = vector.broadcast %cst_11 : f32 to vector<16x512xf32>
    %14 = arith.maximumf %12, %13 : vector<16x512xf32>
    %c0_12 = arith.constant 0 : index
    %c0_13 = arith.constant 0 : index
    %15 = vector.load %arg6[%c0_12, %c0_13] : memref<512x128xf32, #tpu.memory_space<vmem>>, vector<512x128xf32>
    %cst_14 = arith.constant dense<0.000000e+00> : vector<16x128xf32>
    %16 = tpu.matmul %14, %15, %cst_14 {dimension_numbers = #tpu.dot_dimension_numbers<[1], [0], [0], [1], [0, 0, 1, 1], [], []>} : vector<16x512xf32>, vector<512x128xf32>, vector<16x128xf32> -> vector<16x128xf32>
    %c0_15 = arith.constant 0 : index
    %c0_16 = arith.constant 0 : index
    %17 = vector.load %arg7[%c0_15, %c0_16] : memref<1x128xf32, #tpu.memory_space<vmem>>, vector<1x128xf32>
    %18 = vector.broadcast %17 : vector<1x128xf32> to vector<16x128xf32>
    %19 = arith.addf %16, %18 : vector<16x128xf32>
    %cst_17 = arith.constant 0.000000e+00 : f32
    %20 = vector.broadcast %cst_17 : f32 to vector<16x128xf32>
    %21 = arith.maximumf %19, %20 : vector<16x128xf32>
    %c0_18 = arith.constant 0 : index
    %c0_19 = arith.constant 0 : index
    %22 = vector.load %arg8[%c0_18, %c0_19] : memref<128x128xf32, #tpu.memory_space<vmem>>, vector<128x128xf32>
    %cst_20 = arith.constant dense<0.000000e+00> : vector<16x128xf32>
    %23 = tpu.matmul %21, %22, %cst_20 {dimension_numbers = #tpu.dot_dimension_numbers<[1], [0], [0], [1], [0, 0, 1, 1], [], []>} : vector<16x128xf32>, vector<128x128xf32>, vector<16x128xf32> -> vector<16x128xf32>
    %c0_21 = arith.constant 0 : index
    %c0_22 = arith.constant 0 : index
    %24 = vector.load %arg9[%c0_21, %c0_22] : memref<1x128xf32, #tpu.memory_space<vmem>>, vector<1x128xf32>
    %25 = vector.broadcast %24 : vector<1x128xf32> to vector<16x128xf32>
    %26 = arith.addf %23, %25 : vector<16x128xf32>
    %cst_23 = arith.constant dense<0xFF800000> : vector<16xf32>
    %27 = vector.multi_reduction <maximumf>, %26, %cst_23 [1] : vector<16x128xf32> to vector<16xf32>
    %28 = vector.shape_cast %27 : vector<16xf32> to vector<16x1xf32>
    %29 = vector.broadcast %28 : vector<16x1xf32> to vector<16x128xf32>
    %30 = arith.subf %26, %29 : vector<16x128xf32>
    %31 = math.exp %30 : vector<16x128xf32>
    %cst_24 = arith.constant dense<0.000000e+00> : vector<16xf32>
    %32 = vector.multi_reduction <add>, %31, %cst_24 [1] : vector<16x128xf32> to vector<16xf32>
    %33 = vector.shape_cast %32 : vector<16xf32> to vector<16x1xf32>
    %34 = tpu.reciprocal %33 {approx = true} : vector<16x1xf32> -> vector<16x1xf32>
    %35 = vector.broadcast %34 : vector<16x1xf32> to vector<16x128xf32>
    %36 = arith.mulf %31, %35 : vector<16x128xf32>
    %37 = vector.extract_strided_slice %36 {offsets = [0, 0], sizes = [16, 2], strides = [1, 1]} : vector<16x128xf32> to vector<16x2xf32>
    %c0_25 = arith.constant 0 : index
    %c0_26 = arith.constant 0 : index
    %38 = vector.load %arg10[%c0_25, %c0_26] : memref<16x2xf32, #tpu.memory_space<vmem>>, vector<16x2xf32>
    tpu.vector_store %arg10[%c0_25, %c0_26], %37 {strides = array<i32>} : memref<16x2xf32, #tpu.memory_space<vmem>>, vector<16x2xf32>,
    return
  }
  func.func @transform_0(%arg0: i32) -> (i32, i32) {
    %c0_i32 = arith.constant 0 : i32
    %c0_i32_0 = arith.constant 0 : i32
    return %arg0, %c0_i32 : i32, i32
  }
  func.func @transform_1(%arg0: i32) -> (i32, i32) {
    %c0_i32 = arith.constant 0 : i32
    %c0_i32_0 = arith.constant 0 : i32
    %c0_i32_1 = arith.constant 0 : i32
    return %c0_i32, %c0_i32_0 : i32, i32
  }
  func.func @transform_2(%arg0: i32) -> (i32, i32) {
    %c0_i32 = arith.constant 0 : i32
    %c0_i32_0 = arith.constant 0 : i32
    %c0_i32_1 = arith.constant 0 : i32
    return %c0_i32, %c0_i32_0 : i32, i32
  }
  func.func @transform_3(%arg0: i32) -> (i32, i32) {
    %c0_i32 = arith.constant 0 : i32
    %c0_i32_0 = arith.constant 0 : i32
    %c0_i32_1 = arith.constant 0 : i32
    return %c0_i32, %c0_i32_0 : i32, i32
  }
  func.func @transform_4(%arg0: i32) -> (i32, i32) {
    %c0_i32 = arith.constant 0 : i32
    %c0_i32_0 = arith.constant 0 : i32
    %c0_i32_1 = arith.constant 0 : i32
    return %c0_i32, %c0_i32_0 : i32, i32
  }
  func.func @transform_5(%arg0: i32) -> (i32, i32) {
    %c0_i32 = arith.constant 0 : i32
    %c0_i32_0 = arith.constant 0 : i32
    %c0_i32_1 = arith.constant 0 : i32
    return %c0_i32, %c0_i32_0 : i32, i32
  }
  func.func @transform_6(%arg0: i32) -> (i32, i32) {
    %c0_i32 = arith.constant 0 : i32
    %c0_i32_0 = arith.constant 0 : i32
    %c0_i32_1 = arith.constant 0 : i32
    return %c0_i32, %c0_i32_0 : i32, i32
  }
  func.func @transform_7(%arg0: i32) -> (i32, i32) {
    %c0_i32 = arith.constant 0 : i32
    %c0_i32_0 = arith.constant 0 : i32
    %c0_i32_1 = arith.constant 0 : i32
    return %c0_i32, %c0_i32_0 : i32, i32
  }
  func.func @transform_8(%arg0: i32) -> (i32, i32) {
    %c0_i32 = arith.constant 0 : i32
    %c0_i32_0 = arith.constant 0 : i32
    %c0_i32_1 = arith.constant 0 : i32
    return %c0_i32, %c0_i32_0 : i32, i32
  }
  func.func @transform_9(%arg0: i32) -> (i32, i32) {
    %c0_i32 = arith.constant 0 : i32
    %c0_i32_0 = arith.constant 0 : i32
    return %arg0, %c0_i32 : i32, i32
  }
}

</mosaic_0001>

<bundles_post_ra>
// kernel: inverse_dynamics_forward.1
= control target key start
LH: loop header
LB: loop body
LE: loop exit
PB: predicated region body
PF: predicated region fallthrough
CT: control target
= control target key end

     0   :  { %14 = vsyncpa [#allocation3], 0  ;;  %s1511_s0 = inlined_call_operand.hbm [shape: f32[16,128], index: 0, kind: input, shape index: {}]   ;;  %s1512_s1 = inlined_call_operand.hbm [shape: f32[128,512], index: 1, kind: input, shape index: {}]   ;;  %s1513_s2 = inlined_call_operand.hbm [shape: f32[1,512], index: 2, kind: input, shape index: {}]   ;;  %s1514_s3 = inlined_call_operand.hbm [shape: f32[512,512], index: 3, kind: input, shape index: {}]   ;;  %s1515_s4 = inlined_call_operand.vmem [shape: f32[1,512], index: 4, kind: input, shape index: {}]   ;;  %s1516_s5 = inlined_call_operand.hbm [shape: f32[512,128], index: 5, kind: input, shape index: {}]   ;;  %s1517_s6 = inlined_call_operand.vmem [shape: f32[1,128], index: 6, kind: input, shape index: {}]   ;;  %s1518_s7 = inlined_call_operand.hbm [shape: f32[128,128], index: 7, kind: input, shape index: {}]   ;;  %s1519_s8 = inlined_call_operand.vmem [shape: f32[1,128], index: 8, kind: input, shape index: {}]   ;;  %s1520_s9 = inlined_call_operand.vmem [shape: f32[16,2], index: 9, kind: output, shape index: {}]  }
   0x1   :  { %15 = vsyncpa [#allocation5], 0 }
   0x2   :  { %16 = vsyncpa [#allocation8], 0  ;;  %s35_s11 = sshll.u32 %s1512_s1, 4  ;;  %s36_s11 = int_to_ptr.hbm [resolvable:$true] %s35_s11 }
   0x3   :  { %17 = vsyncpa [#allocation11], 0  ;;  %s1364_s12 = smov [#allocation4]   ;;  %s59_s16 = sshll.u32 %s1514_s3, 4  ;;  %s60_s16 = int_to_ptr.hbm [resolvable:$true] %s59_s16 }
   0x4   :  { %s37_s13 = sshll.u32 %s1364_s12, 4  ;;  %s1365_s17 = smov 512   ;;  %s38_s13 = int_to_ptr.vmem [resolvable:$true] %s37_s13 }
   0x5   :  { %s1366_s18 = smov 32   ;;  %s1367_s19 = smov [#allocation7]  }
   0x6   :  { %43 = dma.hbm_to_vmem [thread:$0]  %s36_s11, 8192, %s38_s13, [#allocation5], %s1365_s17, %s1365_s17, %s1366_s18  }
   0x7   :  { %s61_s20 = sshll.u32 %s1367_s19, 4  ;;  %s22_s23 = sshll.u32 %s1511_s0, 4  ;;  %s62_s20 = int_to_ptr.vmem [resolvable:$true] %s61_s20  ;;  %s23_s23 = int_to_ptr.hbm [resolvable:$true] %s22_s23 }
   0x8   :  { %67 = dma.hbm_to_vmem [thread:$0]  %s60_s16, 32768, %s62_s20, [#allocation8], %s1365_s17, %s1365_s17, %s1366_s18  }
   0x9   :  { %s1368_s1 = smov [#allocation2]   ;;  %s49_s3 = sshll.u32 %s1513_s2, 4  ;;  %s50_s3 = int_to_ptr.hbm [resolvable:$true] %s49_s3 }
   0xa   :  { %s24_s24 = sshll.u32 %s1368_s1, 4  ;;  %s1369_s27 = smov 128   ;;  %s25_s24 = int_to_ptr.vmem [resolvable:$true] %s24_s24 }
   0xb   :  { %s1370_s28 = smov 8   ;;  %s1371_s29 = smov [#allocation6]  }
   0xc   :  { %30 = dma.hbm_to_vmem [thread:$0]  %s23_s23, 256, %s25_s24, [#allocation3], %s1369_s27, %s1369_s27, %s1370_s28  }
   0xd   :  { %s51_s30 = sshll.u32 %s1371_s29, 4  ;;  %s74_s0 = sshll.u32 %s1516_s5, 4  ;;  %s52_s30 = int_to_ptr.vmem [resolvable:$true] %s51_s30  ;;  %s75_s0 = int_to_ptr.hbm [resolvable:$true] %s74_s0 }
   0xe   :  { %54 = dma.hbm_to_vmem [thread:$0]  %s50_s3, 64, %s52_s30, [#allocation5]  }
   0xf   :  { %s89_s14 = sshll.u32 %s1518_s7, 4  ;;  %s1372_s15 = smov [#allocation9]   ;;  %s90_s14 = int_to_ptr.hbm [resolvable:$true] %s89_s14 }
  0x10   :  { %s76_s16 = sshll.u32 %s1372_s15, 4  ;;  %s1373_s2 = smov [#allocation10]   ;;  %s77_s16 = int_to_ptr.vmem [resolvable:$true] %s76_s16 }
  0x11   :  { %82 = dma.hbm_to_vmem [thread:$0]  %s75_s0, 8192, %s77_s16, [#allocation8], %s1369_s27, %s1369_s27, %s1370_s28  }
  0x12   :  { %s91_s17 = sshll.u32 %s1373_s2, 4  ;;  %s92_s17 = int_to_ptr.vmem [resolvable:$true] %s91_s17 }
  0x13   :  { %97 = dma.hbm_to_vmem [thread:$0]  %s90_s14, 2048, %s92_s17, [#allocation11], %s1369_s27, %s1369_s27, %s1370_s28  }
  0x14   :  { %1356 = dma.done.wait [#allocation3], 256  }
  0x15   :  { %1357 = vsyncadd [#allocation3], 4294967040 }
  0x16   :  { %1358 = dma.done.wait [#allocation5], 8256  }
  0x17   :  { %1359 = vsyncadd [#allocation5], 4294959040 }
  0x18   :  { %1360 = dma.done.wait [#allocation8], 40960  }
  0x19   :  { %1361 = vsyncadd [#allocation8], 4294926336 }
  0x1a   :  { %1362 = dma.done.wait [#allocation11], 2048  }
  0x1b   :  { %1363 = vsyncadd [#allocation11], 4294965248  ;;  %v186_v0 = vld [vmem:[#allocation4 + $0x1e0] sm:$0xff]  ;;  %v187_v1 = vld [vmem:[#allocation4 + $0x1e8] sm:$0xff]  ;;  %vm1165_vm0 = vcmask 15360  }
  0x1c   :  { %v188_v2 = vld [vmem:[#allocation4 + $0x1f0] sm:$0xff]  ;;  %200 = vmatpush.msra.mxu0 %v186_v0  ;;  %223 = vmatpush.msra.mxu1 %v187_v1  ;;  %v189_v3 = vld [vmem:[#allocation4 + $0x1f8] sm:$0xff]  ;;  %v182_v4 = vld [vmem:[#allocation4 + $0x1c0] sm:$0xff] }
  0x1d   :  { %v183_v5 = vld [vmem:[#allocation4 + $0x1c8] sm:$0xff]  ;;  %246 = vmatpush.msra.mxu2 %v188_v2  ;;  %269 = vmatpush.msra.mxu3 %v189_v3  ;;  %v184_v6 = vld [vmem:[#allocation4 + $0x1d0] sm:$0xff]  ;;  %v185_v7 = vld [vmem:[#allocation4 + $0x1d8] sm:$0xff] }
  0x1e   :  { %v178_v8 = vld [vmem:[#allocation4 + $0x1a0] sm:$0xff]  ;;  %201 = vmatpush.msra.mxu0 %v182_v4  ;;  %224 = vmatpush.msra.mxu1 %v183_v5  ;;  %v179_v9 = vld [vmem:[#allocation4 + $0x1a8] sm:$0xff]  ;;  %v180_v10 = vld [vmem:[#allocation4 + $0x1b0] sm:$0xff] }
  0x1f   :  { %v181_v11 = vld [vmem:[#allocation4 + $0x1b8] sm:$0xff]  ;;  %247 = vmatpush.msra.mxu2 %v184_v6  ;;  %270 = vmatpush.msra.mxu3 %v185_v7  ;;  %v174_v12 = vld [vmem:[#allocation4 + $0x180] sm:$0xff]  ;;  %v175_v13 = vld [vmem:[#allocation4 + $0x188] sm:$0xff] }
  0x20   :  { %202 = vmatpush.msra.mxu0 %v178_v8  ;;  %225 = vmatpush.msra.mxu1 %v179_v9  ;;  %v176_v14 = vld [vmem:[#allocation4 + $0x190] sm:$0xff]  ;;  %v177_v15 = vld [vmem:[#allocation4 + $0x198] sm:$0xff]  ;;  %v170_v16 = vld [vmem:[#allocation4 + $0x160] sm:$0xff] }
  0x21   :  { %248 = vmatpush.msra.mxu2 %v180_v10  ;;  %271 = vmatpush.msra.mxu3 %v181_v11  ;;  %v171_v17 = vld [vmem:[#allocation4 + $0x168] sm:$0xff]  ;;  %v172_v18 = vld [vmem:[#allocation4 + $0x170] sm:$0xff]  ;;  %v173_v19 = vld [vmem:[#allocation4 + $0x178] sm:$0xff] }
  0x22   :  { %203 = vmatpush.msra.mxu0 %v174_v12  ;;  %226 = vmatpush.msra.mxu1 %v175_v13  ;;  %v166_v20 = vld [vmem:[#allocation4 + $0x140] sm:$0xff]  ;;  %v167_v21 = vld [vmem:[#allocation4 + $0x148] sm:$0xff]  ;;  %v168_v22 = vld [vmem:[#allocation4 + $0x150] sm:$0xff] }
  0x23   :  { %249 = vmatpush.msra.mxu2 %v176_v14  ;;  %272 = vmatpush.msra.mxu3 %v177_v15  ;;  %v169_v23 = vld [vmem:[#allocation4 + $0x158] sm:$0xff]  ;;  %v162_v24 = vld [vmem:[#allocation4 + $0x120] sm:$0xff]  ;;  %v163_v25 = vld [vmem:[#allocation4 + $0x128] sm:$0xff] }
  0x24   :  { %204 = vmatpush.msra.mxu0 %v170_v16  ;;  %227 = vmatpush.msra.mxu1 %v171_v17  ;;  %v164_v26 = vld [vmem:[#allocation4 + $0x130] sm:$0xff]  ;;  %v165_v27 = vld [vmem:[#allocation4 + $0x138] sm:$0xff]  ;;  %v158_v28 = vld [vmem:[#allocation4 + $0x100] sm:$0xff] }
  0x25   :  { %250 = vmatpush.msra.mxu2 %v172_v18  ;;  %273 = vmatpush.msra.mxu3 %v173_v19  ;;  %v159_v29 = vld [vmem:[#allocation4 + $0x108] sm:$0xff]  ;;  %v160_v30 = vld [vmem:[#allocation4 + $0x110] sm:$0xff]  ;;  %v161_v31 = vld [vmem:[#allocation4 + $0x118] sm:$0xff] }
  0x26   :  { %205 = vmatpush.msra.mxu0 %v166_v20  ;;  %228 = vmatpush.msra.mxu1 %v167_v21  ;;  %v154_v32 = vld [vmem:[#allocation4 + $0xe0] sm:$0xff]  ;;  %v155_v33 = vld [vmem:[#allocation4 + $0xe8] sm:$0xff]  ;;  %v156_v34 = vld [vmem:[#allocation4 + $0xf0] sm:$0xff] }
  0x27   :  { %251 = vmatpush.msra.mxu2 %v168_v22  ;;  %274 = vmatpush.msra.mxu3 %v169_v23  ;;  %v157_v35 = vld [vmem:[#allocation4 + $0xf8] sm:$0xff]  ;;  %v150_v36 = vld [vmem:[#allocation4 + $0xc0] sm:$0xff]  ;;  %v151_v37 = vld [vmem:[#allocation4 + $0xc8] sm:$0xff] }
  0x28   :  { %206 = vmatpush.msra.mxu0 %v162_v24  ;;  %229 = vmatpush.msra.mxu1 %v163_v25  ;;  %v152_v38 = vld [vmem:[#allocation4 + $0xd0] sm:$0xff]  ;;  %v153_v39 = vld [vmem:[#allocation4 + $0xd8] sm:$0xff]  ;;  %v146_v40 = vld [vmem:[#allocation4 + $0xa0] sm:$0xff] }
  0x29   :  { %252 = vmatpush.msra.mxu2 %v164_v26  ;;  %275 = vmatpush.msra.mxu3 %v165_v27  ;;  %v147_v41 = vld [vmem:[#allocation4 + $0xa8] sm:$0xff]  ;;  %v148_v42 = vld [vmem:[#allocation4 + $0xb0] sm:$0xff]  ;;  %v149_v43 = vld [vmem:[#allocation4 + $0xb8] sm:$0xff] }
  0x2a   :  { %207 = vmatpush.msra.mxu0 %v158_v28  ;;  %230 = vmatpush.msra.mxu1 %v159_v29  ;;  %v142_v44 = vld [vmem:[#allocation4 + $0x80] sm:$0xff]  ;;  %v143_v45 = vld [vmem:[#allocation4 + $0x88] sm:$0xff]  ;;  %v144_v46 = vld [vmem:[#allocation4 + $0x90] sm:$0xff] }
  0x2b   :  { %253 = vmatpush.msra.mxu2 %v160_v30  ;;  %276 = vmatpush.msra.mxu3 %v161_v31  ;;  %v145_v47 = vld [vmem:[#allocation4 + $0x98] sm:$0xff]  ;;  %v138_v48 = vld [vmem:[#allocation4 + $0x60] sm:$0xff]  ;;  %v139_v49 = vld [vmem:[#allocation4 + $0x68] sm:$0xff] }
  0x2c   :  { %208 = vmatpush.msra.mxu0 %v154_v32  ;;  %231 = vmatpush.msra.mxu1 %v155_v33  ;;  %v140_v50 = vld [vmem:[#allocation4 + $0x70] sm:$0xff]  ;;  %v141_v51 = vld [vmem:[#allocation4 + $0x78] sm:$0xff]  ;;  %v134_v52 = vld [vmem:[#allocation4 + $0x40] sm:$0xff] }
  0x2d   :  { %254 = vmatpush.msra.mxu2 %v156_v34  ;;  %277 = vmatpush.msra.mxu3 %v157_v35  ;;  %v135_v53 = vld [vmem:[#allocation4 + $0x48] sm:$0xff]  ;;  %v136_v54 = vld [vmem:[#allocation4 + $0x50] sm:$0xff]  ;;  %v137_v55 = vld [vmem:[#allocation4 + $0x58] sm:$0xff] }
  0x2e   :  { %209 = vmatpush.msra.mxu0 %v150_v36  ;;  %232 = vmatpush.msra.mxu1 %v151_v37  ;;  %v130_v56 = vld [vmem:[#allocation4 + $0x20] sm:$0xff]  ;;  %v131_v57 = vld [vmem:[#allocation4 + $0x28] sm:$0xff]  ;;  %v132_v58 = vld [vmem:[#allocation4 + $0x30] sm:$0xff] }
  0x2f   :  { %255 = vmatpush.msra.mxu2 %v152_v38  ;;  %278 = vmatpush.msra.mxu3 %v153_v39  ;;  %v133_v59 = vld [vmem:[#allocation4 + $0x38] sm:$0xff]  ;;  %v126_v60 = vld [vmem:[#allocation4] sm:$0xff]  ;;  %v127_v61 = vld [vmem:[#allocation4 + $0x8] sm:$0xff] }
  0x30   :  { %210 = vmatpush.msra.mxu0 %v146_v40  ;;  %233 = vmatpush.msra.mxu1 %v147_v41  ;;  %v128_v62 = vld [vmem:[#allocation4 + $0x10] sm:$0xff]  ;;  %v129_v63 = vld [vmem:[#allocation4 + $0x18] sm:$0xff]  ;;  %v360_v1 = vld [vmem:[#allocation7 + $0x1e0] sm:$0xff] }
  0x31   :  { %256 = vmatpush.msra.mxu2 %v148_v42  ;;  %279 = vmatpush.msra.mxu3 %v149_v43  ;;  %v124_v0 = vld [vmem:[#allocation2] sm:$0xff]  ;;  %v424_v2 = vld [vmem:[#allocation7 + $0x3e0] sm:$0xff]  ;;  %v125_v13 = vld [vmem:[#allocation2 + $0x8] sm:$0xff] }
  0x32   :  { %211 = vmatpush.msra.mxu0 %v142_v44  ;;  %234 = vmatpush.msra.mxu1 %v143_v45  ;;  %v488_v3 = vld [vmem:[#allocation7 + $0x5e0] sm:$0xff] }
  0x33   :  { %257 = vmatpush.msra.mxu2 %v144_v46  ;;  %280 = vmatpush.msra.mxu3 %v145_v47  ;;  %v552_v4 = vld [vmem:[#allocation7 + $0x7e0] sm:$0xff] }
  0x34   :  { %212 = vmatpush.msra.mxu0 %v138_v48  ;;  %235 = vmatpush.msra.mxu1 %v139_v49  ;;  %v356_v5 = vld [vmem:[#allocation7 + $0x1c0] sm:$0xff] }
  0x35   :  { %258 = vmatpush.msra.mxu2 %v140_v50  ;;  %281 = vmatpush.msra.mxu3 %v141_v51  ;;  %v420_v6 = vld [vmem:[#allocation7 + $0x3c0] sm:$0xff] }
  0x36   :  { %213 = vmatpush.msra.mxu0 %v134_v52  ;;  %236 = vmatpush.msra.mxu1 %v135_v53  ;;  %v484_v7 = vld [vmem:[#allocation7 + $0x5c0] sm:$0xff] }
  0x37   :  { %259 = vmatpush.msra.mxu2 %v136_v54  ;;  %282 = vmatpush.msra.mxu3 %v137_v55  ;;  %v548_v8 = vld [vmem:[#allocation7 + $0x7c0] sm:$0xff] }
  0x38   :  { %214 = vmatpush.msra.mxu0 %v130_v56  ;;  %237 = vmatpush.msra.mxu1 %v131_v57  ;;  %v352_v9 = vld [vmem:[#allocation7 + $0x1a0] sm:$0xff] }
  0x39   :  { %260 = vmatpush.msra.mxu2 %v132_v58  ;;  %283 = vmatpush.msra.mxu3 %v133_v59  ;;  %v416_v10 = vld [vmem:[#allocation7 + $0x3a0] sm:$0xff] }
  0x3a   :  { %215 = vmatpush.msra.mxu0 %v126_v60  ;;  %238 = vmatpush.msra.mxu1 %v127_v61  ;;  %v480_v11 = vld [vmem:[#allocation7 + $0x5a0] sm:$0xff] }
  0x3b   :  { %261 = vmatpush.msra.mxu2 %v128_v62  ;;  %284 = vmatpush.msra.mxu3 %v129_v63  ;;  %v544_v12 = vld [vmem:[#allocation7 + $0x7a0] sm:$0xff] }
  0x3c   :  { %216 = vmatmul.f32.vlgmr.msra.gmra.mxu0 %v124_v0  ;;  %239 = vmatmul.f32.vlgmr.msra.gmra.mxu1 %v124_v0  ;;  %v348_v14 = vld [vmem:[#allocation7 + $0x180] sm:$0xff] }
  0x3d   :  { %262 = vmatmul.f32.vlgmr.msra.gmra.mxu2 %v124_v0  ;;  %285 = vmatmul.f32.vlgmr.msra.gmra.mxu3 %v124_v0  ;;  %v412_v15 = vld [vmem:[#allocation7 + $0x380] sm:$0xff]  ;;  %v361_v0 = vld [vmem:[#allocation7 + $0x1e8] sm:$0xff] }
  0x3e   :  { %566 = vmatpush.msrb.mxu0 %v360_v1  ;;  %589 = vmatpush.msrb.mxu1 %v424_v2  ;;  %v476_v16 = vld [vmem:[#allocation7 + $0x580] sm:$0xff]  ;;  %v425_v1 = vld [vmem:[#allocation7 + $0x3e8] sm:$0xff] }
  0x3f   :  { %612 = vmatpush.msrb.mxu2 %v488_v3  ;;  %635 = vmatpush.msrb.mxu3 %v552_v4  ;;  %v540_v17 = vld [vmem:[#allocation7 + $0x780] sm:$0xff]  ;;  %v357_v4 = vld [vmem:[#allocation7 + $0x1c8] sm:$0xff] }
  0x40   :  { %567 = vmatpush.msrb.mxu0 %v356_v5  ;;  %590 = vmatpush.msrb.mxu1 %v420_v6  ;;  %v344_v18 = vld [vmem:[#allocation7 + $0x160] sm:$0xff]  ;;  %v421_v5 = vld [vmem:[#allocation7 + $0x3c8] sm:$0xff] }
  0x41   :  { %613 = vmatpush.msrb.mxu2 %v484_v7  ;;  %636 = vmatpush.msrb.mxu3 %v548_v8  ;;  %v408_v19 = vld [vmem:[#allocation7 + $0x360] sm:$0xff]  ;;  %v489_v6 = vld [vmem:[#allocation7 + $0x5e8] sm:$0xff] }
  0x42   :  { %568 = vmatpush.msrb.mxu0 %v352_v9  ;;  %591 = vmatpush.msrb.mxu1 %v416_v10  ;;  %v472_v20 = vld [vmem:[#allocation7 + $0x560] sm:$0xff]  ;;  %v553_v7 = vld [vmem:[#allocation7 + $0x7e8] sm:$0xff] }
  0x43   :  { %614 = vmatpush.msrb.mxu2 %v480_v11  ;;  %637 = vmatpush.msrb.mxu3 %v544_v12  ;;  %v536_v21 = vld [vmem:[#allocation7 + $0x760] sm:$0xff]  ;;  %v353_v8 = vld [vmem:[#allocation7 + $0x1a8] sm:$0xff] }
  0x44   :  { %219 = vmatmul.f32.gmra.mxu0 %v125_v13  ;;  %242 = vmatmul.f32.gmra.mxu1 %v125_v13  ;;  %v340_v22 = vld [vmem:[#allocation7 + $0x140] sm:$0xff]  ;;  %v417_v9 = vld [vmem:[#allocation7 + $0x3a8] sm:$0xff] }
  0x45   :  { %265 = vmatmul.f32.gmra.mxu2 %v125_v13  ;;  %288 = vmatmul.f32.gmra.mxu3 %v125_v13  ;;  %v404_v23 = vld [vmem:[#allocation7 + $0x340] sm:$0xff]  ;;  %v485_v10 = vld [vmem:[#allocation7 + $0x5c8] sm:$0xff] }
  0x46   :  { %569 = vmatpush.msrb.mxu0 %v348_v14  ;;  %592 = vmatpush.msrb.mxu1 %v412_v15  ;;  %v468_v24 = vld [vmem:[#allocation7 + $0x540] sm:$0xff]  ;;  %v549_v11 = vld [vmem:[#allocation7 + $0x7c8] sm:$0xff] }
  0x47   :  { %615 = vmatpush.msrb.mxu2 %v476_v16  ;;  %638 = vmatpush.msrb.mxu3 %v540_v17  ;;  %v532_v25 = vld [vmem:[#allocation7 + $0x740] sm:$0xff]  ;;  %v349_v12 = vld [vmem:[#allocation7 + $0x188] sm:$0xff] }
  0x48   :  { %570 = vmatpush.msrb.mxu0 %v344_v18  ;;  %593 = vmatpush.msrb.mxu1 %v408_v19  ;;  %v336_v26 = vld [vmem:[#allocation7 + $0x120] sm:$0xff]  ;;  %v413_v13 = vld [vmem:[#allocation7 + $0x388] sm:$0xff] }
  0x49   :  { %v400_v27 = vld [vmem:[#allocation7 + $0x320] sm:$0xff]  ;;  %616 = vmatpush.msrb.mxu2 %v472_v20  ;;  %639 = vmatpush.msrb.mxu3 %v536_v21  ;;  %v481_v14 = vld [vmem:[#allocation7 + $0x5a8] sm:$0xff] }
  0x4a   :  { %571 = vmatpush.msrb.mxu0 %v340_v22  ;;  %594 = vmatpush.msrb.mxu1 %v404_v23  ;;  %v464_v28 = vld [vmem:[#allocation7 + $0x520] sm:$0xff]  ;;  %v545_v15 = vld [vmem:[#allocation7 + $0x7a8] sm:$0xff] }
  0x4b   :  { %v528_v29 = vld [vmem:[#allocation7 + $0x720] sm:$0xff]  ;;  %617 = vmatpush.msrb.mxu2 %v468_v24  ;;  %640 = vmatpush.msrb.mxu3 %v532_v25  ;;  %v345_v16 = vld [vmem:[#allocation7 + $0x168] sm:$0xff] }
  0x4c   :  { %v332_v30 = vld [vmem:[#allocation7 + $0x100] sm:$0xff]  ;;  %572 = vmatpush.msrb.mxu0 %v336_v26  ;;  %595 = vmatpush.msrb.mxu1 %v400_v27  ;;  %v409_v17 = vld [vmem:[#allocation7 + $0x368] sm:$0xff] }
  0x4d   :  { %v396_v31 = vld [vmem:[#allocation7 + $0x300] sm:$0xff]  ;;  %618 = vmatpush.msrb.mxu2 %v464_v28  ;;  %641 = vmatpush.msrb.mxu3 %v528_v29  ;;  %v477_v18 = vld [vmem:[#allocation7 + $0x588] sm:$0xff] }
  0x4e   :  { %v460_v32 = vld [vmem:[#allocation7 + $0x500] sm:$0xff]  ;;  %573 = vmatpush.msrb.mxu0 %v332_v30  ;;  %596 = vmatpush.msrb.mxu1 %v396_v31  ;;  %v541_v19 = vld [vmem:[#allocation7 + $0x788] sm:$0xff] }
  0x4f   :  { %v524_v33 = vld [vmem:[#allocation7 + $0x700] sm:$0xff]  ;;  %619 = vmatpush.msrb.mxu2 %v460_v32  ;;  %v341_v20 = vld [vmem:[#allocation7 + $0x148] sm:$0xff] }
  0x50   :  { %v328_v34 = vld [vmem:[#allocation7 + $0xe0] sm:$0xff]  ;;  %642 = vmatpush.msrb.mxu3 %v524_v33  ;;  %v405_v21 = vld [vmem:[#allocation7 + $0x348] sm:$0xff] }
  0x51   :  { %v392_v35 = vld [vmem:[#allocation7 + $0x2e0] sm:$0xff]  ;;  %574 = vmatpush.msrb.mxu0 %v328_v34  ;;  %v473_v22 = vld [vmem:[#allocation7 + $0x568] sm:$0xff] }
  0x52   :  { %v456_v36 = vld [vmem:[#allocation7 + $0x4e0] sm:$0xff]  ;;  %597 = vmatpush.msrb.mxu1 %v392_v35  ;;  %v537_v23 = vld [vmem:[#allocation7 + $0x768] sm:$0xff] }
  0x53   :  { %v520_v37 = vld [vmem:[#allocation7 + $0x6e0] sm:$0xff]  ;;  %620 = vmatpush.msrb.mxu2 %v456_v36  ;;  %v337_v24 = vld [vmem:[#allocation7 + $0x128] sm:$0xff] }
  0x54   :  { %v324_v38 = vld [vmem:[#allocation7 + $0xc0] sm:$0xff]  ;;  %643 = vmatpush.msrb.mxu3 %v520_v37  ;;  %v401_v25 = vld [vmem:[#allocation7 + $0x328] sm:$0xff] }
  0x55   :  { %v388_v39 = vld [vmem:[#allocation7 + $0x2c0] sm:$0xff]  ;;  %575 = vmatpush.msrb.mxu0 %v324_v38  ;;  %v469_v26 = vld [vmem:[#allocation7 + $0x548] sm:$0xff] }
  0x56   :  { %v452_v40 = vld [vmem:[#allocation7 + $0x4c0] sm:$0xff]  ;;  %598 = vmatpush.msrb.mxu1 %v388_v39  ;;  %v533_v27 = vld [vmem:[#allocation7 + $0x748] sm:$0xff] }
  0x57   :  { %v516_v41 = vld [vmem:[#allocation7 + $0x6c0] sm:$0xff]  ;;  %621 = vmatpush.msrb.mxu2 %v452_v40  ;;  %v333_v28 = vld [vmem:[#allocation7 + $0x108] sm:$0xff] }
  0x58   :  { %v320_v42 = vld [vmem:[#allocation7 + $0xa0] sm:$0xff]  ;;  %644 = vmatpush.msrb.mxu3 %v516_v41  ;;  %v397_v29 = vld [vmem:[#allocation7 + $0x308] sm:$0xff] }
  0x59   :  { %v384_v43 = vld [vmem:[#allocation7 + $0x2a0] sm:$0xff]  ;;  %576 = vmatpush.msrb.mxu0 %v320_v42  ;;  %v465_v30 = vld [vmem:[#allocation7 + $0x528] sm:$0xff] }
  0x5a   :  { %v448_v44 = vld [vmem:[#allocation7 + $0x4a0] sm:$0xff]  ;;  %599 = vmatpush.msrb.mxu1 %v384_v43  ;;  %v529_v31 = vld [vmem:[#allocation7 + $0x728] sm:$0xff] }
  0x5b   :  { %v512_v45 = vld [vmem:[#allocation7 + $0x6a0] sm:$0xff]  ;;  %622 = vmatpush.msrb.mxu2 %v448_v44  ;;  %v329_v32 = vld [vmem:[#allocation7 + $0xe8] sm:$0xff] }
  0x5c   :  { %v316_v46 = vld [vmem:[#allocation7 + $0x80] sm:$0xff]  ;;  %645 = vmatpush.msrb.mxu3 %v512_v45  ;;  %v393_v33 = vld [vmem:[#allocation7 + $0x2e8] sm:$0xff] }
  0x5d   :  { %v380_v47 = vld [vmem:[#allocation7 + $0x280] sm:$0xff]  ;;  %577 = vmatpush.msrb.mxu0 %v316_v46  ;;  %v461_v34 = vld [vmem:[#allocation7 + $0x508] sm:$0xff] }
  0x5e   :  { %v444_v48 = vld [vmem:[#allocation7 + $0x480] sm:$0xff]  ;;  %600 = vmatpush.msrb.mxu1 %v380_v47  ;;  %v525_v35 = vld [vmem:[#allocation7 + $0x708] sm:$0xff] }
  0x5f   :  { %v508_v49 = vld [vmem:[#allocation7 + $0x680] sm:$0xff]  ;;  %623 = vmatpush.msrb.mxu2 %v444_v48  ;;  %v325_v36 = vld [vmem:[#allocation7 + $0xc8] sm:$0xff] }
  0x60   :  { %v312_v50 = vld [vmem:[#allocation7 + $0x60] sm:$0xff]  ;;  %646 = vmatpush.msrb.mxu3 %v508_v49  ;;  %v389_v37 = vld [vmem:[#allocation7 + $0x2c8] sm:$0xff] }
  0x61   :  { %v376_v51 = vld [vmem:[#allocation7 + $0x260] sm:$0xff]  ;;  %578 = vmatpush.msrb.mxu0 %v312_v50  ;;  %v457_v38 = vld [vmem:[#allocation7 + $0x4e8] sm:$0xff] }
  0x62   :  { %v440_v52 = vld [vmem:[#allocation7 + $0x460] sm:$0xff]  ;;  %601 = vmatpush.msrb.mxu1 %v376_v51  ;;  %v521_v39 = vld [vmem:[#allocation7 + $0x6e8] sm:$0xff] }
  0x63   :  { %v504_v53 = vld [vmem:[#allocation7 + $0x660] sm:$0xff]  ;;  %624 = vmatpush.msrb.mxu2 %v440_v52  ;;  %v321_v40 = vld [vmem:[#allocation7 + $0xa8] sm:$0xff] }
  0x64   :  { %v308_v54 = vld [vmem:[#allocation7 + $0x40] sm:$0xff]  ;;  %647 = vmatpush.msrb.mxu3 %v504_v53  ;;  %v385_v41 = vld [vmem:[#allocation7 + $0x2a8] sm:$0xff] }
  0x65   :  { %v372_v55 = vld [vmem:[#allocation7 + $0x240] sm:$0xff]  ;;  %579 = vmatpush.msrb.mxu0 %v308_v54  ;;  %v453_v42 = vld [vmem:[#allocation7 + $0x4c8] sm:$0xff] }
  0x66   :  { %v436_v56 = vld [vmem:[#allocation7 + $0x440] sm:$0xff]  ;;  %602 = vmatpush.msrb.mxu1 %v372_v55  ;;  %v517_v43 = vld [vmem:[#allocation7 + $0x6c8] sm:$0xff] }
  0x67   :  { %v500_v57 = vld [vmem:[#allocation7 + $0x640] sm:$0xff]  ;;  %625 = vmatpush.msrb.mxu2 %v436_v56  ;;  %v317_v44 = vld [vmem:[#allocation7 + $0x88] sm:$0xff] }
  0x68   :  { %v304_v58 = vld [vmem:[#allocation7 + $0x20] sm:$0xff]  ;;  %648 = vmatpush.msrb.mxu3 %v500_v57  ;;  %v381_v45 = vld [vmem:[#allocation7 + $0x288] sm:$0xff] }
  0x69   :  { %v368_v59 = vld [vmem:[#allocation7 + $0x220] sm:$0xff]  ;;  %580 = vmatpush.msrb.mxu0 %v304_v58  ;;  %v313_v46 = vld [vmem:[#allocation7 + $0x68] sm:$0xff] }
  0x6a   :  { %v432_v60 = vld [vmem:[#allocation7 + $0x420] sm:$0xff]  ;;  %603 = vmatpush.msrb.mxu1 %v368_v59  ;;  %v377_v47 = vld [vmem:[#allocation7 + $0x268] sm:$0xff] }
  0x6b   :  { %v496_v61 = vld [vmem:[#allocation7 + $0x620] sm:$0xff]  ;;  %626 = vmatpush.msrb.mxu2 %v432_v60  ;;  %v309_v48 = vld [vmem:[#allocation7 + $0x48] sm:$0xff] }
  0x6c   :  { %v300_v62 = vld [vmem:[#allocation7] sm:$0xff]  ;;  %649 = vmatpush.msrb.mxu3 %v496_v61  ;;  %v373_v49 = vld [vmem:[#allocation7 + $0x248] sm:$0xff] }
  0x6d   :  { %v364_v63 = vld [vmem:[#allocation7 + $0x200] sm:$0xff]  ;;  %581 = vmatpush.msrb.mxu0 %v300_v62  ;;  %v449_v50 = vld [vmem:[#allocation7 + $0x4a8] sm:$0xff] }
  0x6e   :  { %v428_v2 = vld [vmem:[#allocation7 + $0x400] sm:$0xff]  ;;  %604 = vmatpush.msrb.mxu1 %v364_v63  ;;  %v513_v51 = vld [vmem:[#allocation7 + $0x6a8] sm:$0xff] }
  0x6f   :  { %v492_v3 = vld [vmem:[#allocation7 + $0x600] sm:$0xff]  ;;  %658 = vmatpush.msra.mxu0 %v361_v0  ;;  %627 = vmatpush.msrb.mxu2 %v428_v2  ;;  %v305_v52 = vld [vmem:[#allocation7 + $0x28] sm:$0xff]  ;;  %v190_v2 = vld [vmem:[#allocation6] sm:$0xf] }
  0x70   :  { %681 = vmatpush.msra.mxu1 %v425_v1  ;;  %650 = vmatpush.msrb.mxu3 %v492_v3  ;;  %v369_v53 = vld [vmem:[#allocation7 + $0x228] sm:$0xff]  ;;  %v192_v3 = vperm.slane %v190_v2, 0 }
  0x71   :  { %659 = vmatpush.msra.mxu0 %v357_v4  ;;  %704 = vmatpush.msra.mxu2 %v489_v6  ;;  %v445_v54 = vld [vmem:[#allocation7 + $0x488] sm:$0xff]  ;;  %v193_v4 = vperm.slane %v190_v2, 1 }
  0x72   :  { %682 = vmatpush.msra.mxu1 %v421_v5  ;;  %727 = vmatpush.msra.mxu3 %v553_v7  ;;  %v509_v55 = vld [vmem:[#allocation7 + $0x688] sm:$0xff] }
  0x73   :  { %660 = vmatpush.msra.mxu0 %v353_v8  ;;  %705 = vmatpush.msra.mxu2 %v485_v10  ;;  %v301_v56 = vld [vmem:[#allocation7 + $0x8] sm:$0xff] }
  0x74   :  { %683 = vmatpush.msra.mxu1 %v417_v9  ;;  %728 = vmatpush.msra.mxu3 %v549_v11  ;;  %v365_v57 = vld [vmem:[#allocation7 + $0x208] sm:$0xff]  ;;  %v362_v11 = vld [vmem:[#allocation7 + $0x1f0] sm:$0xff] }
  0x75   :  { %661 = vmatpush.msra.mxu0 %v349_v12  ;;  %706 = vmatpush.msra.mxu2 %v481_v14  ;;  %v441_v58 = vld [vmem:[#allocation7 + $0x468] sm:$0xff]  ;;  %v426_v12 = vld [vmem:[#allocation7 + $0x3f0] sm:$0xff]  ;;  %v195_v14 = vperm.slane %v190_v2, 3 }
  0x76   :  { %684 = vmatpush.msra.mxu1 %v413_v13  ;;  %729 = vmatpush.msra.mxu3 %v545_v15  ;;  %v505_v59 = vld [vmem:[#allocation7 + $0x668] sm:$0xff]  ;;  %v194_v13 = vperm.slane %v190_v2, 2  ;;  %v358_v15 = vld [vmem:[#allocation7 + $0x1d0] sm:$0xff] }
  0x77   :  { %662 = vmatpush.msra.mxu0 %v345_v16  ;;  %707 = vmatpush.msra.mxu2 %v477_v18  ;;  %v437_v60 = vld [vmem:[#allocation7 + $0x448] sm:$0xff]  ;;  %v422_v16 = vld [vmem:[#allocation7 + $0x3d0] sm:$0xff] }
  0x78   :  { %685 = vmatpush.msra.mxu1 %v409_v17  ;;  %730 = vmatpush.msra.mxu3 %v541_v19  ;;  %v501_v61 = vld [vmem:[#allocation7 + $0x648] sm:$0xff]  ;;  %v354_v19 = vld [vmem:[#allocation7 + $0x1b0] sm:$0xff] }
  0x79   :  { %663 = vmatpush.msra.mxu0 %v341_v20  ;;  %708 = vmatpush.msra.mxu2 %v473_v22  ;;  %v433_v62 = vld [vmem:[#allocation7 + $0x428] sm:$0xff]  ;;  %v418_v20 = vld [vmem:[#allocation7 + $0x3b0] sm:$0xff] }
  0x7a   :  { %686 = vmatpush.msra.mxu1 %v405_v21  ;;  %731 = vmatpush.msra.mxu3 %v537_v23  ;;  %v497_v63 = vld [vmem:[#allocation7 + $0x628] sm:$0xff]  ;;  %v386_v2 = vld [vmem:[#allocation7 + $0x2b0] sm:$0xff] }
  0x7b   :  { %664 = vmatpush.msra.mxu0 %v337_v24  ;;  %709 = vmatpush.msra.mxu2 %v469_v26  ;;  %v429_v0 = vld [vmem:[#allocation7 + $0x408] sm:$0xff] }
  0x7c   :  { %687 = vmatpush.msra.mxu1 %v401_v25  ;;  %732 = vmatpush.msra.mxu3 %v533_v27  ;;  %v493_v1 = vld [vmem:[#allocation7 + $0x608] sm:$0xff] }
  0x7d   :  { %665 = vmatpush.msra.mxu0 %v333_v28  ;;  %710 = vmatpush.msra.mxu2 %v465_v30  ;;  %v414_v30 = vld [vmem:[#allocation7 + $0x390] sm:$0xff] }
  0x7e   :  { %688 = vmatpush.msra.mxu1 %v397_v29  ;;  %733 = vmatpush.msra.mxu3 %v529_v31  ;;  %v350_v29 = vld [vmem:[#allocation7 + $0x190] sm:$0xff] }
  0x7f   :  { %666 = vmatpush.msra.mxu0 %v329_v32  ;;  %711 = vmatpush.msra.mxu2 %v461_v34  ;;  %v554_v34 = vld [vmem:[#allocation7 + $0x7f0] sm:$0xff] }
  0x80   :  { %689 = vmatpush.msra.mxu1 %v393_v33  ;;  %734 = vmatpush.msra.mxu3 %v525_v35  ;;  %v490_v33 = vld [vmem:[#allocation7 + $0x5f0] sm:$0xff] }
  0x81   :  { %667 = vmatpush.msra.mxu0 %v325_v36  ;;  %712 = vmatpush.msra.mxu2 %v457_v38  ;;  %v346_v35 = vld [vmem:[#allocation7 + $0x170] sm:$0xff] }
  0x82   :  { %690 = vmatpush.msra.mxu1 %v389_v37  ;;  %735 = vmatpush.msra.mxu3 %v521_v39  ;;  %v410_v36 = vld [vmem:[#allocation7 + $0x370] sm:$0xff] }
  0x83   :  { %668 = vmatpush.msra.mxu0 %v321_v40  ;;  %713 = vmatpush.msra.mxu2 %v453_v42  ;;  %v486_v37 = vld [vmem:[#allocation7 + $0x5d0] sm:$0xff] }
  0x84   :  { %691 = vmatpush.msra.mxu1 %v385_v41  ;;  %736 = vmatpush.msra.mxu3 %v517_v43  ;;  %v550_v38 = vld [vmem:[#allocation7 + $0x7d0] sm:$0xff] }
  0x85   :  { %669 = vmatpush.msra.mxu0 %v317_v44  ;;  %714 = vmatpush.msra.mxu2 %v449_v50  ;;  %v342_v41 = vld [vmem:[#allocation7 + $0x150] sm:$0xff] }
  0x86   :  { %692 = vmatpush.msra.mxu1 %v381_v45  ;;  %737 = vmatpush.msra.mxu3 %v513_v51  ;;  %v406_v42 = vld [vmem:[#allocation7 + $0x350] sm:$0xff] }
  0x87   :  { %670 = vmatpush.msra.mxu0 %v313_v46  ;;  %715 = vmatpush.msra.mxu2 %v445_v54  ;;  %v482_v45 = vld [vmem:[#allocation7 + $0x5b0] sm:$0xff] }
  0x88   :  { %693 = vmatpush.msra.mxu1 %v377_v47  ;;  %738 = vmatpush.msra.mxu3 %v509_v55  ;;  %v546_v46 = vld [vmem:[#allocation7 + $0x7b0] sm:$0xff] }
  0x89   :  { %671 = vmatpush.msra.mxu0 %v309_v48  ;;  %716 = vmatpush.msra.mxu2 %v441_v58  ;;  %v338_v47 = vld [vmem:[#allocation7 + $0x130] sm:$0xff] }
  0x8a   :  { %694 = vmatpush.msra.mxu1 %v373_v49  ;;  %739 = vmatpush.msra.mxu3 %v505_v59  ;;  %v402_v48 = vld [vmem:[#allocation7 + $0x330] sm:$0xff] }
  0x8b   :  { %672 = vmatpush.msra.mxu0 %v305_v52  ;;  %717 = vmatpush.msra.mxu2 %v437_v60  ;;  %v478_v51 = vld [vmem:[#allocation7 + $0x590] sm:$0xff] }
  0x8c   :  { %695 = vmatpush.msra.mxu1 %v369_v53  ;;  %740 = vmatpush.msra.mxu3 %v501_v61  ;;  %v542_v52 = vld [vmem:[#allocation7 + $0x790] sm:$0xff] }
  0x8d   :  { %673 = vmatpush.msra.mxu0 %v301_v56  ;;  %718 = vmatpush.msra.mxu2 %v433_v62  ;;  %v334_v53 = vld [vmem:[#allocation7 + $0x110] sm:$0xff] }
  0x8e   :  { %696 = vmatpush.msra.mxu1 %v365_v57  ;;  %741 = vmatpush.msra.mxu3 %v497_v63  ;;  %v398_v54 = vld [vmem:[#allocation7 + $0x310] sm:$0xff] }
  0x8f   :  { %719 = vmatpush.msra.mxu2 %v429_v0  ;;  %v474_v55 = vld [vmem:[#allocation7 + $0x570] sm:$0xff] }
  0x90   :  { %742 = vmatpush.msra.mxu3 %v493_v1  ;;  %v538_v56 = vld [vmem:[#allocation7 + $0x770] sm:$0xff] }
  0x91   :  { %v330_v57 = vld [vmem:[#allocation7 + $0xf0] sm:$0xff] }
  0x92   :  { %v394_v58 = vld [vmem:[#allocation7 + $0x2f0] sm:$0xff] }
  0x93   :  { %v470_v59 = vld [vmem:[#allocation7 + $0x550] sm:$0xff] }
  0x94   :  { %v534_v60 = vld [vmem:[#allocation7 + $0x750] sm:$0xff] }
  0x95   :  { %v326_v61 = vld [vmem:[#allocation7 + $0xd0] sm:$0xff] }
  0x96   :  { %v390_v62 = vld [vmem:[#allocation7 + $0x2d0] sm:$0xff] }
  0x97   :  { %v466_v63 = vld [vmem:[#allocation7 + $0x530] sm:$0xff] }
  0x98   :  { %v530_v0 = vld [vmem:[#allocation7 + $0x730] sm:$0xff] }
  0x99   :  { %v322_v1 = vld [vmem:[#allocation7 + $0xb0] sm:$0xff] }
  0xb9   :  { %v217_v5 = vpop.f32.mrf.mxu0  ;;  %v240_v6 = vpop.f32.mrf.mxu1 }
  0xba   :  { %v218_v7 = vadd.f32 %v217_v5, %v192_v3  ;;  %v241_v8 = vadd.f32 %v240_v6, %v193_v4  ;;  %v318_v5 = vld [vmem:[#allocation7 + $0x90] sm:$0xff] }
  0xbb   :  { %v382_v6 = vld [vmem:[#allocation7 + $0x290] sm:$0xff] }
  0xbc   :  { %v1442_v9 = vmax.f32 %v218_v7, 0.0  ;;  %v1444_v10 = vmax.f32 %v241_v8, 0.0  ;;  %v458_v7 = vld [vmem:[#allocation7 + $0x4f0] sm:$0xff] }
  0xbd   :  { %v522_v8 = vld [vmem:[#allocation7 + $0x6f0] sm:$0xff] }
  0xbe   :  { %582 = vmatmul.f32.vlgmr.msrb.gmra.mxu0 %v1442_v9  ;;  %605 = vmatmul.f32.vlgmr.msrb.gmra.mxu1 %v1444_v10 }
  0xbf   :  { %750 = vmatpush.msrb.mxu0 %v362_v11  ;;  %773 = vmatpush.msrb.mxu1 %v426_v12  ;;  %v314_v11 = vld [vmem:[#allocation7 + $0x70] sm:$0xff] }
  0xc0   :  { %v263_v17 = vpop.f32.mrf.mxu2  ;;  %v286_v18 = vpop.f32.mrf.mxu3  ;;  %v378_v12 = vld [vmem:[#allocation7 + $0x270] sm:$0xff] }
  0xc1   :  { %v264_v21 = vadd.f32 %v263_v17, %v194_v13  ;;  %v287_v22 = vadd.f32 %v286_v18, %v195_v14  ;;  %751 = vmatpush.msrb.mxu0 %v358_v15  ;;  %774 = vmatpush.msrb.mxu1 %v422_v16  ;;  %v220_v23 = vpop.f32.mrf.mxu0  ;;  %v243_v24 = vpop.f32.mrf.mxu1  ;;  %v310_v15 = vld [vmem:[#allocation7 + $0x50] sm:$0xff] }
  0xc2   :  { %v221_v25 = vadd.f32 %v220_v23, %v192_v3  ;;  %v244_v26 = vadd.f32 %v243_v24, %v193_v4  ;;  %v462_v3 = vld [vmem:[#allocation7 + $0x510] sm:$0xff] }
  0xc3   :  { %v1448_v27 = vmax.f32 %v264_v21, 0.0  ;;  %v1450_v28 = vmax.f32 %v287_v22, 0.0  ;;  %752 = vmatpush.msrb.mxu0 %v354_v19  ;;  %775 = vmatpush.msrb.mxu1 %v418_v20  ;;  %v526_v4 = vld [vmem:[#allocation7 + $0x710] sm:$0xff] }
  0xc4   :  { %v1452_v31 = vmax.f32 %v221_v25, 0.0  ;;  %v1454_v32 = vmax.f32 %v244_v26, 0.0  ;;  %v374_v16 = vld [vmem:[#allocation7 + $0x250] sm:$0xff] }
  0xc5   :  { %628 = vmatmul.f32.vlgmr.msrb.gmra.mxu2 %v1448_v27  ;;  %651 = vmatmul.f32.vlgmr.msrb.gmra.mxu3 %v1450_v28  ;;  %v450_v17 = vld [vmem:[#allocation7 + $0x4b0] sm:$0xff] }
  0xc6   :  { %753 = vmatpush.msrb.mxu0 %v350_v29  ;;  %776 = vmatpush.msrb.mxu1 %v414_v30  ;;  %v514_v18 = vld [vmem:[#allocation7 + $0x6b0] sm:$0xff]  ;;  %v363_v29 = vld [vmem:[#allocation7 + $0x1f8] sm:$0xff] }
  0xc7   :  { %796 = vmatpush.msrb.mxu2 %v490_v33  ;;  %819 = vmatpush.msrb.mxu3 %v554_v34  ;;  %v306_v19 = vld [vmem:[#allocation7 + $0x30] sm:$0xff]  ;;  %v427_v30 = vld [vmem:[#allocation7 + $0x3f8] sm:$0xff] }
  0xc8   :  { %585 = vmatmul.f32.gmra.mxu0 %v1452_v31  ;;  %608 = vmatmul.f32.gmra.mxu1 %v1454_v32  ;;  %v266_v39 = vpop.f32.mrf.mxu2  ;;  %v289_v40 = vpop.f32.mrf.mxu3  ;;  %v370_v20 = vld [vmem:[#allocation7 + $0x230] sm:$0xff] }
  0xc9   :  { %754 = vmatpush.msrb.mxu0 %v346_v35  ;;  %777 = vmatpush.msrb.mxu1 %v410_v36  ;;  %v267_v43 = vadd.f32 %v266_v39, %v194_v13  ;;  %v290_v44 = vadd.f32 %v289_v40, %v195_v14  ;;  %v454_v13 = vld [vmem:[#allocation7 + $0x4d0] sm:$0xff]  ;;  %v359_v35 = vld [vmem:[#allocation7 + $0x1d8] sm:$0xff] }
  0xca   :  { %797 = vmatpush.msrb.mxu2 %v486_v37  ;;  %820 = vmatpush.msrb.mxu3 %v550_v38  ;;  %v518_v14 = vld [vmem:[#allocation7 + $0x6d0] sm:$0xff]  ;;  %v423_v36 = vld [vmem:[#allocation7 + $0x3d8] sm:$0xff] }
  0xcb   :  { %v1460_v49 = vmax.f32 %v267_v43, 0.0  ;;  %v1462_v50 = vmax.f32 %v290_v44, 0.0  ;;  %755 = vmatpush.msrb.mxu0 %v342_v41  ;;  %778 = vmatpush.msrb.mxu1 %v406_v42  ;;  %v446_v21 = vld [vmem:[#allocation7 + $0x490] sm:$0xff]  ;;  %v355_v39 = vld [vmem:[#allocation7 + $0x1b8] sm:$0xff] }
  0xcc   :  { %798 = vmatpush.msrb.mxu2 %v482_v45  ;;  %821 = vmatpush.msrb.mxu3 %v546_v46  ;;  %v510_v22 = vld [vmem:[#allocation7 + $0x690] sm:$0xff]  ;;  %v419_v40 = vld [vmem:[#allocation7 + $0x3b8] sm:$0xff] }
  0xcd   :  { %756 = vmatpush.msrb.mxu0 %v338_v47  ;;  %779 = vmatpush.msrb.mxu1 %v402_v48  ;;  %v302_v23 = vld [vmem:[#allocation7 + $0x10] sm:$0xff]  ;;  %v351_v43 = vld [vmem:[#allocation7 + $0x198] sm:$0xff] }
  0xce   :  { %799 = vmatpush.msrb.mxu2 %v478_v51  ;;  %822 = vmatpush.msrb.mxu3 %v542_v52  ;;  %v366_v24 = vld [vmem:[#allocation7 + $0x210] sm:$0xff]  ;;  %v415_v44 = vld [vmem:[#allocation7 + $0x398] sm:$0xff] }
  0xcf   :  { %631 = vmatmul.f32.gmra.mxu2 %v1460_v49  ;;  %654 = vmatmul.f32.gmra.mxu3 %v1462_v50  ;;  %v442_v25 = vld [vmem:[#allocation7 + $0x470] sm:$0xff]  ;;  %v491_v45 = vld [vmem:[#allocation7 + $0x5f8] sm:$0xff] }
  0xd0   :  { %757 = vmatpush.msrb.mxu0 %v334_v53  ;;  %780 = vmatpush.msrb.mxu1 %v398_v54  ;;  %v506_v26 = vld [vmem:[#allocation7 + $0x670] sm:$0xff]  ;;  %v555_v46 = vld [vmem:[#allocation7 + $0x7f8] sm:$0xff] }
  0xd1   :  { %800 = vmatpush.msrb.mxu2 %v474_v55  ;;  %823 = vmatpush.msrb.mxu3 %v538_v56  ;;  %v438_v33 = vld [vmem:[#allocation7 + $0x450] sm:$0xff]  ;;  %v347_v47 = vld [vmem:[#allocation7 + $0x178] sm:$0xff] }
  0xd2   :  { %674 = vmatmul.f32.vlgmr.msra.gmra.mxu0 %v1442_v9  ;;  %697 = vmatmul.f32.vlgmr.msra.gmra.mxu1 %v1444_v10  ;;  %v502_v34 = vld [vmem:[#allocation7 + $0x650] sm:$0xff]  ;;  %v411_v48 = vld [vmem:[#allocation7 + $0x378] sm:$0xff] }
  0xd3   :  { %758 = vmatpush.msrb.mxu0 %v330_v57  ;;  %781 = vmatpush.msrb.mxu1 %v394_v58  ;;  %v434_v37 = vld [vmem:[#allocation7 + $0x430] sm:$0xff]  ;;  %v487_v51 = vld [vmem:[#allocation7 + $0x5d8] sm:$0xff] }
  0xd4   :  { %801 = vmatpush.msrb.mxu2 %v470_v59  ;;  %824 = vmatpush.msrb.mxu3 %v534_v60  ;;  %v498_v38 = vld [vmem:[#allocation7 + $0x630] sm:$0xff]  ;;  %v551_v52 = vld [vmem:[#allocation7 + $0x7d8] sm:$0xff] }
  0xd5   :  { %759 = vmatpush.msrb.mxu0 %v326_v61  ;;  %782 = vmatpush.msrb.mxu1 %v390_v62  ;;  %v430_v41 = vld [vmem:[#allocation7 + $0x410] sm:$0xff]  ;;  %v343_v53 = vld [vmem:[#allocation7 + $0x158] sm:$0xff] }
  0xd6   :  { %802 = vmatpush.msrb.mxu2 %v466_v63  ;;  %825 = vmatpush.msrb.mxu3 %v530_v0  ;;  %v494_v42 = vld [vmem:[#allocation7 + $0x610] sm:$0xff]  ;;  %v407_v54 = vld [vmem:[#allocation7 + $0x358] sm:$0xff] }
  0xd7   :  { %760 = vmatpush.msrb.mxu0 %v322_v1  ;;  %783 = vmatpush.msrb.mxu1 %v386_v2  ;;  %v483_v55 = vld [vmem:[#allocation7 + $0x5b8] sm:$0xff] }
  0xd8   :  { %803 = vmatpush.msrb.mxu2 %v462_v3  ;;  %826 = vmatpush.msrb.mxu3 %v526_v4  ;;  %v547_v56 = vld [vmem:[#allocation7 + $0x7b8] sm:$0xff] }
  0xd9   :  { %720 = vmatmul.f32.vlgmr.msra.gmra.mxu2 %v1448_v27  ;;  %743 = vmatmul.f32.vlgmr.msra.gmra.mxu3 %v1450_v28  ;;  %v339_v57 = vld [vmem:[#allocation7 + $0x138] sm:$0xff] }
  0xda   :  { %761 = vmatpush.msrb.mxu0 %v318_v5  ;;  %784 = vmatpush.msrb.mxu1 %v382_v6  ;;  %v403_v58 = vld [vmem:[#allocation7 + $0x338] sm:$0xff] }
  0xdb   :  { %804 = vmatpush.msrb.mxu2 %v458_v7  ;;  %827 = vmatpush.msrb.mxu3 %v522_v8  ;;  %v479_v59 = vld [vmem:[#allocation7 + $0x598] sm:$0xff] }
  0xdc   :  { %677 = vmatmul.f32.gmra.mxu0 %v1452_v31  ;;  %700 = vmatmul.f32.gmra.mxu1 %v1454_v32  ;;  %v543_v60 = vld [vmem:[#allocation7 + $0x798] sm:$0xff] }
  0xdd   :  { %762 = vmatpush.msrb.mxu0 %v314_v11  ;;  %785 = vmatpush.msrb.mxu1 %v378_v12  ;;  %v335_v61 = vld [vmem:[#allocation7 + $0x118] sm:$0xff] }
  0xde   :  { %805 = vmatpush.msrb.mxu2 %v454_v13  ;;  %828 = vmatpush.msrb.mxu3 %v518_v14  ;;  %v399_v62 = vld [vmem:[#allocation7 + $0x318] sm:$0xff] }
  0xdf   :  { %763 = vmatpush.msrb.mxu0 %v310_v15  ;;  %786 = vmatpush.msrb.mxu1 %v374_v16  ;;  %v475_v63 = vld [vmem:[#allocation7 + $0x578] sm:$0xff] }
  0xe0   :  { %806 = vmatpush.msrb.mxu2 %v450_v17  ;;  %829 = vmatpush.msrb.mxu3 %v514_v18  ;;  %v539_v0 = vld [vmem:[#allocation7 + $0x778] sm:$0xff] }
  0xe1   :  { %764 = vmatpush.msrb.mxu0 %v306_v19  ;;  %787 = vmatpush.msrb.mxu1 %v370_v20  ;;  %v331_v1 = vld [vmem:[#allocation7 + $0xf8] sm:$0xff] }
  0xe2   :  { %807 = vmatpush.msrb.mxu2 %v446_v21  ;;  %830 = vmatpush.msrb.mxu3 %v510_v22  ;;  %v395_v2 = vld [vmem:[#allocation7 + $0x2f8] sm:$0xff] }
  0xe3   :  { %723 = vmatmul.f32.gmra.mxu2 %v1460_v49  ;;  %746 = vmatmul.f32.gmra.mxu3 %v1462_v50  ;;  %v471_v3 = vld [vmem:[#allocation7 + $0x558] sm:$0xff] }
  0xe4   :  { %765 = vmatpush.msrb.mxu0 %v302_v23  ;;  %788 = vmatpush.msrb.mxu1 %v366_v24  ;;  %v535_v4 = vld [vmem:[#allocation7 + $0x758] sm:$0xff] }
  0xe5   :  { %808 = vmatpush.msrb.mxu2 %v442_v25  ;;  %831 = vmatpush.msrb.mxu3 %v506_v26  ;;  %v327_v5 = vld [vmem:[#allocation7 + $0xd8] sm:$0xff] }
  0xe6   :  { %842 = vmatpush.msra.mxu0 %v363_v29  ;;  %865 = vmatpush.msra.mxu1 %v427_v30  ;;  %v391_v6 = vld [vmem:[#allocation7 + $0x2d8] sm:$0xff] }
  0xe7   :  { %766 = vmatmul.f32.vlgmr.msrb.gmra.mxu0 %v1442_v9  ;;  %789 = vmatmul.f32.vlgmr.msrb.gmra.mxu1 %v1444_v10  ;;  %v467_v7 = vld [vmem:[#allocation7 + $0x538] sm:$0xff] }
  0xe8   :  { %809 = vmatpush.msrb.mxu2 %v438_v33  ;;  %832 = vmatpush.msrb.mxu3 %v502_v34  ;;  %v531_v8 = vld [vmem:[#allocation7 + $0x738] sm:$0xff] }
  0xe9   :  { %843 = vmatpush.msra.mxu0 %v359_v35  ;;  %866 = vmatpush.msra.mxu1 %v423_v36  ;;  %v323_v11 = vld [vmem:[#allocation7 + $0xb8] sm:$0xff] }
  0xea   :  { %810 = vmatpush.msrb.mxu2 %v434_v37  ;;  %833 = vmatpush.msrb.mxu3 %v498_v38  ;;  %v387_v12 = vld [vmem:[#allocation7 + $0x2b8] sm:$0xff] }
  0xeb   :  { %844 = vmatpush.msra.mxu0 %v355_v39  ;;  %867 = vmatpush.msra.mxu1 %v419_v40  ;;  %v463_v13 = vld [vmem:[#allocation7 + $0x518] sm:$0xff] }
  0xec   :  { %811 = vmatpush.msrb.mxu2 %v430_v41  ;;  %834 = vmatpush.msrb.mxu3 %v494_v42  ;;  %v527_v14 = vld [vmem:[#allocation7 + $0x718] sm:$0xff] }
  0xed   :  { %845 = vmatpush.msra.mxu0 %v351_v43  ;;  %868 = vmatpush.msra.mxu1 %v415_v44  ;;  %v319_v15 = vld [vmem:[#allocation7 + $0x98] sm:$0xff]  ;;  %v956_v44 = vld [vmem:[#allocation9 + $0x70] sm:$0xff] }
  0xee   :  { %888 = vmatpush.msra.mxu2 %v491_v45  ;;  %911 = vmatpush.msra.mxu3 %v555_v46  ;;  %v383_v16 = vld [vmem:[#allocation7 + $0x298] sm:$0xff] }
  0xef   :  { %812 = vmatmul.f32.vlgmr.msrb.gmra.mxu2 %v1448_v27  ;;  %835 = vmatmul.f32.vlgmr.msrb.gmra.mxu3 %v1450_v28  ;;  %v459_v17 = vld [vmem:[#allocation7 + $0x4f8] sm:$0xff] }
  0xf0   :  { %846 = vmatpush.msra.mxu0 %v347_v47  ;;  %869 = vmatpush.msra.mxu1 %v411_v48  ;;  %v523_v18 = vld [vmem:[#allocation7 + $0x6f8] sm:$0xff]  ;;  %v955_v47 = vld [vmem:[#allocation9 + $0x68] sm:$0xff]  ;;  %v952_v48 = vld [vmem:[#allocation9 + $0x50] sm:$0xff] }
  0xf1   :  { %889 = vmatpush.msra.mxu2 %v487_v51  ;;  %912 = vmatpush.msra.mxu3 %v551_v52  ;;  %v315_v19 = vld [vmem:[#allocation7 + $0x78] sm:$0xff]  ;;  %v951_v51 = vld [vmem:[#allocation9 + $0x48] sm:$0xff]  ;;  %v950_v52 = vld [vmem:[#allocation9 + $0x40] sm:$0xff] }
  0xf2   :  { %769 = vmatmul.f32.gmra.mxu0 %v1452_v31  ;;  %792 = vmatmul.f32.gmra.mxu1 %v1454_v32  ;;  %v379_v20 = vld [vmem:[#allocation7 + $0x278] sm:$0xff] }
  0xf3   :  { %847 = vmatpush.msra.mxu0 %v343_v53  ;;  %870 = vmatpush.msra.mxu1 %v407_v54  ;;  %v455_v21 = vld [vmem:[#allocation7 + $0x4d8] sm:$0xff]  ;;  %v971_v54 = vld [vmem:[#allocation9 + $0xe8] sm:$0xff] }
  0xf4   :  { %890 = vmatpush.msra.mxu2 %v483_v55  ;;  %913 = vmatpush.msra.mxu3 %v547_v56  ;;  %v519_v22 = vld [vmem:[#allocation7 + $0x6d8] sm:$0xff]  ;;  %v946_v55 = vld [vmem:[#allocation9 + $0x20] sm:$0xff] }
  0xf5   :  { %848 = vmatpush.msra.mxu0 %v339_v57  ;;  %871 = vmatpush.msra.mxu1 %v403_v58  ;;  %v311_v23 = vld [vmem:[#allocation7 + $0x58] sm:$0xff]  ;;  %v944_v57 = vld [vmem:[#allocation9 + $0x10] sm:$0xff] }
  0xf6   :  { %891 = vmatpush.msra.mxu2 %v479_v59  ;;  %914 = vmatpush.msra.mxu3 %v543_v60  ;;  %v375_v24 = vld [vmem:[#allocation7 + $0x258] sm:$0xff]  ;;  %v968_v58 = vld [vmem:[#allocation9 + $0xd0] sm:$0xff]  ;;  %v943_v59 = vld [vmem:[#allocation9 + $0x8] sm:$0xff] }
  0xf7   :  { %849 = vmatpush.msra.mxu0 %v335_v61  ;;  %872 = vmatpush.msra.mxu1 %v399_v62  ;;  %v451_v25 = vld [vmem:[#allocation7 + $0x4b8] sm:$0xff]  ;;  %v967_v60 = vld [vmem:[#allocation9 + $0xc8] sm:$0xff]  ;;  %v942_v61 = vld [vmem:[#allocation9] sm:$0xff] }
  0xf8   :  { %892 = vmatpush.msra.mxu2 %v475_v63  ;;  %915 = vmatpush.msra.mxu3 %v539_v0  ;;  %v515_v26 = vld [vmem:[#allocation7 + $0x6b8] sm:$0xff]  ;;  %v966_v62 = vld [vmem:[#allocation9 + $0xc0] sm:$0xff] }
  0xf9   :  { %815 = vmatmul.f32.gmra.mxu2 %v1460_v49  ;;  %838 = vmatmul.f32.gmra.mxu3 %v1462_v50  ;;  %v307_v29 = vld [vmem:[#allocation7 + $0x38] sm:$0xff] }
  0xfa   :  { %850 = vmatpush.msra.mxu0 %v331_v1  ;;  %873 = vmatpush.msra.mxu1 %v395_v2  ;;  %v371_v30 = vld [vmem:[#allocation7 + $0x238] sm:$0xff]  ;;  %v964_v1 = vld [vmem:[#allocation9 + $0xb0] sm:$0xff] }
  0xfb   :  { %893 = vmatpush.msra.mxu2 %v471_v3  ;;  %916 = vmatpush.msra.mxu3 %v535_v4  ;;  %v447_v33 = vld [vmem:[#allocation7 + $0x498] sm:$0xff]  ;;  %v988_v2 = vld [vmem:[#allocation9 + $0x170] sm:$0xff]  ;;  %v1493_v3 = vld [vmem:[%s1515_s4] sm:$0xf] }
  0xfc   :  { %851 = vmatpush.msra.mxu0 %v327_v5  ;;  %874 = vmatpush.msra.mxu1 %v391_v6  ;;  %v511_v34 = vld [vmem:[#allocation7 + $0x698] sm:$0xff]  ;;  %v963_v4 = vld [vmem:[#allocation9 + $0xa8] sm:$0xff]  ;;  %v962_v6 = vld [vmem:[#allocation9 + $0xa0] sm:$0xff] }
  0xfd   :  { %894 = vmatpush.msra.mxu2 %v467_v7  ;;  %917 = vmatpush.msra.mxu3 %v531_v8  ;;  %v303_v35 = vld [vmem:[#allocation7 + $0x18] sm:$0xff]  ;;  %v987_v5 = vld [vmem:[#allocation9 + $0x168] sm:$0xff]  ;;  %v558_v7 = vperm.slane %v1493_v3, 0  ;;  %v986_v8 = vld [vmem:[#allocation9 + $0x160] sm:$0xff] }
  0xfe   :  { %852 = vmatpush.msra.mxu0 %v323_v11  ;;  %875 = vmatpush.msra.mxu1 %v387_v12  ;;  %v367_v36 = vld [vmem:[#allocation7 + $0x218] sm:$0xff] }
  0xff   :  { %895 = vmatpush.msra.mxu2 %v463_v13  ;;  %918 = vmatpush.msra.mxu3 %v527_v14  ;;  %v443_v37 = vld [vmem:[#allocation7 + $0x478] sm:$0xff] }
 0x100   :  { %853 = vmatpush.msra.mxu0 %v319_v15  ;;  %876 = vmatpush.msra.mxu1 %v383_v16  ;;  %v507_v38 = vld [vmem:[#allocation7 + $0x678] sm:$0xff]  ;;  %v960_v15 = vld [vmem:[#allocation9 + $0x90] sm:$0xff] }
 0x101   :  { %896 = vmatpush.msra.mxu2 %v459_v17  ;;  %919 = vmatpush.msra.mxu3 %v523_v18  ;;  %v439_v39 = vld [vmem:[#allocation7 + $0x458] sm:$0xff]  ;;  %v984_v16 = vld [vmem:[#allocation9 + $0x150] sm:$0xff] }
 0x102   :  { %854 = vmatpush.msra.mxu0 %v315_v19  ;;  %877 = vmatpush.msra.mxu1 %v379_v20  ;;  %v503_v40 = vld [vmem:[#allocation7 + $0x658] sm:$0xff]  ;;  %v959_v19 = vld [vmem:[#allocation9 + $0x88] sm:$0xff] }
 0x103   :  { %897 = vmatpush.msra.mxu2 %v455_v21  ;;  %920 = vmatpush.msra.mxu3 %v519_v22  ;;  %v957_v41 = vld [vmem:[#allocation9 + $0x78] sm:$0xff]  ;;  %v983_v20 = vld [vmem:[#allocation9 + $0x148] sm:$0xff]  ;;  %v958_v21 = vld [vmem:[#allocation9 + $0x80] sm:$0xff] }
 0x104   :  { %855 = vmatpush.msra.mxu0 %v311_v23  ;;  %878 = vmatpush.msra.mxu1 %v375_v24  ;;  %v435_v42 = vld [vmem:[#allocation7 + $0x438] sm:$0xff]  ;;  %v982_v23 = vld [vmem:[#allocation9 + $0x140] sm:$0xff] }
 0x105   :  { %898 = vmatpush.msra.mxu2 %v451_v25  ;;  %921 = vmatpush.msra.mxu3 %v515_v26  ;;  %v499_v43 = vld [vmem:[#allocation7 + $0x638] sm:$0xff] }
 0x106   :  { %856 = vmatpush.msra.mxu0 %v307_v29  ;;  %879 = vmatpush.msra.mxu1 %v371_v30  ;;  %v431_v45 = vld [vmem:[#allocation7 + $0x418] sm:$0xff] }
 0x107   :  { %899 = vmatpush.msra.mxu2 %v447_v33  ;;  %922 = vmatpush.msra.mxu3 %v511_v34  ;;  %v495_v46 = vld [vmem:[#allocation7 + $0x618] sm:$0xff]  ;;  %v980_v34 = vld [vmem:[#allocation9 + $0x130] sm:$0xff] }
 0x108   :  { %857 = vmatpush.msra.mxu0 %v303_v35  ;;  %880 = vmatpush.msra.mxu1 %v367_v36  ;;  %v949_v53 = vld [vmem:[#allocation9 + $0x38] sm:$0xff] }
 0x109   :  { %900 = vmatpush.msra.mxu2 %v443_v37  ;;  %923 = vmatpush.msra.mxu3 %v507_v38  ;;  %v969_v56 = vld [vmem:[#allocation9 + $0xd8] sm:$0xff]  ;;  %v979_v38 = vld [vmem:[#allocation9 + $0x128] sm:$0xff] }
 0x10a   :  { %858 = vmatmul.f32.vlgmr.msra.gmra.mxu0 %v1442_v9  ;;  %881 = vmatmul.f32.vlgmr.msra.gmra.mxu1 %v1444_v10  ;;  %v954_v9 = vld [vmem:[#allocation9 + $0x60] sm:$0xff]  ;;  %v953_v10 = vld [vmem:[#allocation9 + $0x58] sm:$0xff] }
 0x10b   :  { %901 = vmatpush.msra.mxu2 %v439_v39  ;;  %924 = vmatpush.msra.mxu3 %v503_v40  ;;  %v965_v63 = vld [vmem:[#allocation9 + $0xb8] sm:$0xff]  ;;  %v978_v40 = vld [vmem:[#allocation9 + $0x120] sm:$0xff] }
 0x10c   :  { %1010 = vmatpush.msrb.mxu0 %v957_v41  ;;  %v989_v0 = vld [vmem:[#allocation9 + $0x178] sm:$0xff]  ;;  %v559_v41 = vperm.slane %v1493_v3, 1 }
 0x10d   :  { %902 = vmatpush.msra.mxu2 %v435_v42  ;;  %925 = vmatpush.msra.mxu3 %v499_v43  ;;  %v961_v13 = vld [vmem:[#allocation9 + $0x98] sm:$0xff] }
 0x10e   :  { %1011 = vmatpush.msrb.mxu0 %v956_v44  ;;  %v985_v14 = vld [vmem:[#allocation9 + $0x158] sm:$0xff] }
 0x10f   :  { %903 = vmatpush.msra.mxu2 %v431_v45  ;;  %926 = vmatpush.msra.mxu3 %v495_v46  ;;  %v981_v33 = vld [vmem:[#allocation9 + $0x138] sm:$0xff] }
 0x110   :  { %904 = vmatmul.f32.vlgmr.msra.gmra.mxu2 %v1448_v27  ;;  %927 = vmatmul.f32.vlgmr.msra.gmra.mxu3 %v1450_v28  ;;  %v973_v27 = vld [vmem:[#allocation9 + $0xf8] sm:$0xff]  ;;  %v972_v28 = vld [vmem:[#allocation9 + $0xf0] sm:$0xff] }
 0x111   :  { %1012 = vmatpush.msrb.mxu0 %v955_v47  ;;  %1033 = vmatpush.msrb.mxu1 %v973_v27  ;;  %v977_v45 = vld [vmem:[#allocation9 + $0x118] sm:$0xff]  ;;  %v976_v47 = vld [vmem:[#allocation9 + $0x110] sm:$0xff] }
 0x112   :  { %861 = vmatmul.f32.gmra.mxu0 %v1452_v31  ;;  %884 = vmatmul.f32.gmra.mxu1 %v1454_v32  ;;  %v948_v31 = vld [vmem:[#allocation9 + $0x30] sm:$0xff]  ;;  %v947_v32 = vld [vmem:[#allocation9 + $0x28] sm:$0xff] }
 0x113   :  { %1013 = vmatpush.msrb.mxu0 %v954_v9  ;;  %1034 = vmatpush.msrb.mxu1 %v972_v28 }
 0x114   :  { %1056 = vmatpush.msrb.mxu2 %v989_v0  ;;  %v999_v0 = vld [vmem:[#allocation9 + $0x1c8] sm:$0xff] }
 0x115   :  { %1014 = vmatpush.msrb.mxu0 %v953_v10  ;;  %1035 = vmatpush.msrb.mxu1 %v971_v54 }
 0x116   :  { %1057 = vmatpush.msrb.mxu2 %v988_v2 }
 0x117   :  { %1015 = vmatpush.msrb.mxu0 %v952_v48  ;;  %v975_v48 = vld [vmem:[#allocation9 + $0x108] sm:$0xff] }
 0x118   :  { %907 = vmatmul.f32.gmra.mxu2 %v1460_v49  ;;  %930 = vmatmul.f32.gmra.mxu3 %v1462_v50  ;;  %v970_v49 = vld [vmem:[#allocation9 + $0xe0] sm:$0xff]  ;;  %v945_v50 = vld [vmem:[#allocation9 + $0x18] sm:$0xff] }
 0x119   :  { %1016 = vmatpush.msrb.mxu0 %v951_v51  ;;  %1036 = vmatpush.msrb.mxu1 %v970_v49  ;;  %v1005_v51 = vld [vmem:[#allocation9 + $0x1f8] sm:$0xff] }
 0x11a   :  { %1058 = vmatpush.msrb.mxu2 %v987_v5  ;;  %1079 = vmatpush.msrb.mxu3 %v1005_v51  ;;  %v560_v5 = vperm.slane %v1493_v3, 2 }
 0x11b   :  { %1017 = vmatpush.msrb.mxu0 %v950_v52  ;;  %1037 = vmatpush.msrb.mxu1 %v969_v56  ;;  %v974_v52 = vld [vmem:[#allocation9 + $0x100] sm:$0xff] }
 0x11c   :  { %1059 = vmatpush.msrb.mxu2 %v986_v8  ;;  %v1002_v56 = vld [vmem:[#allocation9 + $0x1e0] sm:$0xff]  ;;  %v997_v8 = vld [vmem:[#allocation9 + $0x1b8] sm:$0xff] }
 0x11d   :  { %1018 = vmatpush.msrb.mxu0 %v949_v53  ;;  %1038 = vmatpush.msrb.mxu1 %v968_v58 }
 0x11e   :  { %1060 = vmatpush.msrb.mxu2 %v985_v14  ;;  %v995_v14 = vld [vmem:[#allocation9 + $0x1a8] sm:$0xff] }
 0x11f   :  { %1019 = vmatpush.msrb.mxu0 %v948_v31  ;;  %1039 = vmatpush.msrb.mxu1 %v967_v60  ;;  %v1004_v31 = vld [vmem:[#allocation9 + $0x1f0] sm:$0xff] }
 0x120   :  { %1061 = vmatpush.msrb.mxu2 %v984_v16  ;;  %1080 = vmatpush.msrb.mxu3 %v1004_v31  ;;  %v1000_v60 = vld [vmem:[#allocation9 + $0x1d0] sm:$0xff]  ;;  %v994_v16 = vld [vmem:[#allocation9 + $0x1a0] sm:$0xff] }
 0x121   :  { %1020 = vmatpush.msrb.mxu0 %v947_v32  ;;  %1040 = vmatpush.msrb.mxu1 %v966_v62 }
 0x122   :  { %1062 = vmatpush.msrb.mxu2 %v983_v20 }
 0x123   :  { %1021 = vmatpush.msrb.mxu0 %v946_v55  ;;  %1041 = vmatpush.msrb.mxu1 %v965_v63  ;;  %v1003_v55 = vld [vmem:[#allocation9 + $0x1e8] sm:$0xff] }
 0x124   :  { %1063 = vmatpush.msrb.mxu2 %v982_v23  ;;  %1081 = vmatpush.msrb.mxu3 %v1003_v55  ;;  %v992_v23 = vld [vmem:[#allocation9 + $0x190] sm:$0xff] }
 0x125   :  { %1022 = vmatpush.msrb.mxu0 %v945_v50  ;;  %1042 = vmatpush.msrb.mxu1 %v964_v1  ;;  %v1118_v55 = vld [vmem:[#allocation10 + $0x70] sm:$0xff] }
 0x126   :  { %1064 = vmatpush.msrb.mxu2 %v981_v33  ;;  %1082 = vmatpush.msrb.mxu3 %v1002_v56  ;;  %v1115_v56 = vld [vmem:[#allocation10 + $0x58] sm:$0xff] }
 0x127   :  { %1023 = vmatpush.msrb.mxu0 %v944_v57  ;;  %1043 = vmatpush.msrb.mxu1 %v963_v4  ;;  %v998_v4 = vld [vmem:[#allocation9 + $0x1c0] sm:$0xff] }
 0x128   :  { %1065 = vmatpush.msrb.mxu2 %v980_v34 }
 0x129   :  { %1024 = vmatpush.msrb.mxu0 %v943_v59  ;;  %1044 = vmatpush.msrb.mxu1 %v962_v6  ;;  %v1001_v59 = vld [vmem:[#allocation9 + $0x1d8] sm:$0xff] }
 0x12a   :  { %1066 = vmatpush.msrb.mxu2 %v979_v38  ;;  %1083 = vmatpush.msrb.mxu3 %v1001_v59  ;;  %v1112_v59 = vld [vmem:[#allocation10 + $0x40] sm:$0xff] }
 0x12b   :  { %1025 = vmatpush.msrb.mxu0 %v942_v61  ;;  %1045 = vmatpush.msrb.mxu1 %v961_v13 }
 0x12c   :  { %1067 = vmatpush.msrb.mxu2 %v978_v40  ;;  %1084 = vmatpush.msrb.mxu3 %v1000_v60  ;;  %v1111_v60 = vld [vmem:[#allocation10 + $0x38] sm:$0xff] }
 0x12d   :  { %1046 = vmatpush.msrb.mxu1 %v960_v15 }
 0x12e   :  { %1068 = vmatpush.msrb.mxu2 %v977_v45  ;;  %1085 = vmatpush.msrb.mxu3 %v999_v0  ;;  %v1107_v0 = vld [vmem:[#allocation10 + $0x18] sm:$0xff] }
 0x12f   :  { %1047 = vmatpush.msrb.mxu1 %v959_v19  ;;  %v993_v19 = vld [vmem:[#allocation9 + $0x198] sm:$0xff] }
 0x130   :  { %1069 = vmatpush.msrb.mxu2 %v976_v47  ;;  %1086 = vmatpush.msrb.mxu3 %v998_v4  ;;  %v1104_v4 = vld [vmem:[#allocation10] sm:$0xff] }
 0x131   :  { %1048 = vmatpush.msrb.mxu1 %v958_v21 }
 0x132   :  { %1070 = vmatpush.msrb.mxu2 %v975_v48  ;;  %1087 = vmatpush.msrb.mxu3 %v997_v8 }
 0x134   :  { %1071 = vmatpush.msrb.mxu2 %v974_v52 }
 0x13b   :  { %v583_v11 = vpop.f32.mrf.mxu0  ;;  %v606_v17 = vpop.f32.mrf.mxu1 }
 0x13c   :  { %v584_v12 = vadd.f32 %v583_v11, %v558_v7  ;;  %v996_v11 = vld [vmem:[#allocation9 + $0x1b0] sm:$0xff] }
 0x13d   :  { %1088 = vmatpush.msrb.mxu3 %v996_v11 }
 0x13e   :  { %v607_v18 = vadd.f32 %v606_v17, %v584_v12 }
 0x13f   :  { %1089 = vmatpush.msrb.mxu3 %v995_v14 }
 0x141   :  { %1090 = vmatpush.msrb.mxu3 %v994_v16 }
 0x143   :  { %1091 = vmatpush.msrb.mxu3 %v993_v19 }
 0x145   :  { %v586_v25 = vpop.f32.mrf.mxu0  ;;  %v609_v36 = vpop.f32.mrf.mxu1  ;;  %1092 = vmatpush.msrb.mxu3 %v992_v23 }
 0x146   :  { %v587_v29 = vadd.f32 %v586_v25, %v558_v7  ;;  %v991_v25 = vld [vmem:[#allocation9 + $0x188] sm:$0xff] }
 0x147   :  { %1093 = vmatpush.msrb.mxu3 %v991_v25 }
 0x148   :  { %v629_v22 = vpop.f32.mrf.mxu2  ;;  %v652_v26 = vpop.f32.mrf.mxu3  ;;  %v610_v37 = vadd.f32 %v609_v36, %v587_v29 }
 0x149   :  { %v630_v24 = vadd.f32 %v629_v22, %v607_v18 }
 0x14b   :  { %v653_v30 = vadd.f32 %v652_v26, %v630_v24 }
 0x14d   :  { %v934_v35 = vmax.f32 %v653_v30, 0.0  ;;  %v990_v30 = vld [vmem:[#allocation9 + $0x180] sm:$0xff] }
 0x14e   :  { %1094 = vmatpush.msrb.mxu3 %v990_v30 }
 0x14f   :  { %1026 = vmatmul.f32.vlgmr.msrb.gmra.mxu0 %v934_v35  ;;  %v675_v43 = vpop.f32.mrf.mxu0  ;;  %v698_v27 = vpop.f32.mrf.mxu1 }
 0x150   :  { %v676_v9 = vadd.f32 %v675_v43, %v559_v41 }
 0x152   :  { %v632_v39 = vpop.f32.mrf.mxu2  ;;  %v655_v44 = vpop.f32.mrf.mxu3  ;;  %v699_v28 = vadd.f32 %v698_v27, %v676_v9 }
 0x153   :  { %v633_v42 = vadd.f32 %v632_v39, %v610_v37 }
 0x155   :  { %v656_v46 = vadd.f32 %v655_v44, %v633_v42 }
 0x157   :  { %v938_v10 = vmax.f32 %v656_v46, 0.0 }
 0x159   :  { %1029 = vmatmul.f32.gmra.mxu0 %v938_v10  ;;  %v678_v50 = vpop.f32.mrf.mxu0  ;;  %v701_v61 = vpop.f32.mrf.mxu1 }
 0x15a   :  { %v679_v57 = vadd.f32 %v678_v50, %v559_v41  ;;  %v561_v41 = vperm.slane %v1493_v3, 3  ;;  %v1119_v3 = vld [vmem:[#allocation10 + $0x78] sm:$0xff]  ;;  %v1116_v50 = vld [vmem:[#allocation10 + $0x60] sm:$0xff] }
 0x15b   :  { %1124 = vmatpush.msra.mxu0 %v1119_v3  ;;  %1176 = vmatpush.msra.mxu1 %v1119_v3 }
 0x15c   :  { %v721_v53 = vpop.f32.mrf.mxu2  ;;  %v744_v54 = vpop.f32.mrf.mxu3  ;;  %v702_v62 = vadd.f32 %v701_v61, %v679_v57  ;;  %v1114_v57 = vld [vmem:[#allocation10 + $0x50] sm:$0xff] }
 0x15d   :  { %v722_v32 = vadd.f32 %v721_v53, %v699_v28  ;;  %1125 = vmatpush.msra.mxu0 %v1118_v55  ;;  %1177 = vmatpush.msra.mxu1 %v1118_v55  ;;  %v1110_v61 = vld [vmem:[#allocation10 + $0x30] sm:$0xff] }
 0x15f   :  { %v745_v49 = vadd.f32 %v744_v54, %v722_v32 }
 0x161   :  { %v935_v58 = vmax.f32 %v745_v49, 0.0  ;;  %v1117_v49 = vld [vmem:[#allocation10 + $0x68] sm:$0xff] }
 0x162   :  { %1126 = vmatpush.msra.mxu0 %v1117_v49  ;;  %1178 = vmatpush.msra.mxu1 %v1117_v49 }
 0x163   :  { %1049 = vmatmul.f32.vlgmr.msrb.gmra.mxu1 %v935_v58  ;;  %v1113_v58 = vld [vmem:[#allocation10 + $0x48] sm:$0xff] }
 0x164   :  { %v767_v7 = vpop.f32.mrf.mxu0  ;;  %v790_v15 = vpop.f32.mrf.mxu1  ;;  %1127 = vmatpush.msra.mxu0 %v1116_v50  ;;  %1179 = vmatpush.msra.mxu1 %v1116_v50 }
 0x165   :  { %v768_v13 = vadd.f32 %v767_v7, %v560_v5 }
 0x166   :  { %v724_v63 = vpop.f32.mrf.mxu2  ;;  %v747_v2 = vpop.f32.mrf.mxu3  ;;  %1128 = vmatpush.msra.mxu0 %v1115_v56  ;;  %1180 = vmatpush.msra.mxu1 %v1115_v56 }
 0x167   :  { %v725_v1 = vadd.f32 %v724_v63, %v702_v62  ;;  %v791_v17 = vadd.f32 %v790_v15, %v768_v13  ;;  %v1109_v62 = vld [vmem:[#allocation10 + $0x28] sm:$0xff]  ;;  %v1108_v63 = vld [vmem:[#allocation10 + $0x20] sm:$0xff] }
 0x168   :  { %1129 = vmatpush.msra.mxu0 %v1114_v57  ;;  %1181 = vmatpush.msra.mxu1 %v1114_v57 }
 0x169   :  { %v748_v6 = vadd.f32 %v747_v2, %v725_v1  ;;  %v1106_v1 = vld [vmem:[#allocation10 + $0x10] sm:$0xff]  ;;  %v1105_v2 = vld [vmem:[#allocation10 + $0x8] sm:$0xff] }
 0x16a   :  { %1130 = vmatpush.msra.mxu0 %v1113_v58  ;;  %1182 = vmatpush.msra.mxu1 %v1113_v58 }
 0x16b   :  { %v939_v12 = vmax.f32 %v748_v6, 0.0  ;;  %v1202_v6 = vld [vmem:[%s1517_s6] ss:$0 sm:$0xff] }
 0x16c   :  { %1131 = vmatpush.msra.mxu0 %v1112_v59  ;;  %1183 = vmatpush.msra.mxu1 %v1112_v59 }
 0x16d   :  { %1052 = vmatmul.f32.gmra.mxu1 %v939_v12 }
 0x16e   :  { %1132 = vmatpush.msra.mxu0 %v1111_v60  ;;  %1184 = vmatpush.msra.mxu1 %v1111_v60 }
 0x16f   :  { %v770_v21 = vpop.f32.mrf.mxu0  ;;  %v793_v33 = vpop.f32.mrf.mxu1 }
 0x170   :  { %v771_v26 = vadd.f32 %v770_v21, %v560_v5  ;;  %1133 = vmatpush.msra.mxu0 %v1110_v61  ;;  %1185 = vmatpush.msra.mxu1 %v1110_v61 }
 0x172   :  { %v813_v18 = vpop.f32.mrf.mxu2  ;;  %v836_v22 = vpop.f32.mrf.mxu3  ;;  %v794_v34 = vadd.f32 %v793_v33, %v771_v26  ;;  %1134 = vmatpush.msra.mxu0 %v1109_v62  ;;  %1186 = vmatpush.msra.mxu1 %v1109_v62  ;;  %v1203_v26 = vld [vmem:[%s1519_s8] ss:$0 sm:$0xff] }
 0x173   :  { %v814_v20 = vadd.f32 %v813_v18, %v791_v17 }
 0x174   :  { %1135 = vmatpush.msra.mxu0 %v1108_v63  ;;  %1187 = vmatpush.msra.mxu1 %v1108_v63 }
 0x175   :  { %v837_v24 = vadd.f32 %v836_v22, %v814_v20 }
 0x176   :  { %1136 = vmatpush.msra.mxu0 %v1107_v0  ;;  %1188 = vmatpush.msra.mxu1 %v1107_v0 }
 0x177   :  { %v936_v29 = vmax.f32 %v837_v24, 0.0 }
 0x178   :  { %1137 = vmatpush.msra.mxu0 %v1106_v1  ;;  %1189 = vmatpush.msra.mxu1 %v1106_v1 }
 0x179   :  { %1072 = vmatmul.f32.vlgmr.msrb.gmra.mxu2 %v936_v29 }
 0x17a   :  { %1138 = vmatpush.msra.mxu0 %v1105_v2  ;;  %1190 = vmatpush.msra.mxu1 %v1105_v2 }
 0x17c   :  { %v816_v35 = vpop.f32.mrf.mxu2  ;;  %v839_v37 = vpop.f32.mrf.mxu3  ;;  %1139 = vmatpush.msra.mxu0 %v1104_v4  ;;  %1191 = vmatpush.msra.mxu1 %v1104_v4 }
 0x17d   :  { %v817_v36 = vadd.f32 %v816_v35, %v794_v34 }
 0x17f   :  { %v840_v38 = vadd.f32 %v839_v37, %v817_v36 }
 0x181   :  { %v940_v39 = vmax.f32 %v840_v38, 0.0 }
 0x183   :  { %1075 = vmatmul.f32.gmra.mxu2 %v940_v39 }
 0x187   :  { %v859_v40 = vpop.f32.mrf.mxu0  ;;  %v882_v43 = vpop.f32.mrf.mxu1 }
 0x188   :  { %v860_v42 = vadd.f32 %v859_v40, %v561_v41 }
 0x18a   :  { %v883_v44 = vadd.f32 %v882_v43, %v860_v42 }
 0x18f   :  { %v862_v45 = vpop.f32.mrf.mxu0  ;;  %v885_v52 = vpop.f32.mrf.mxu1 }
 0x190   :  { %v863_v10 = vadd.f32 %v862_v45, %v561_v41 }
 0x192   :  { %v886_v27 = vadd.f32 %v885_v52, %v863_v10 }
 0x193   :  { %v905_v46 = vpop.f32.mrf.mxu2  ;;  %v928_v47 = vpop.f32.mrf.mxu3 }
 0x194   :  { %v906_v9 = vadd.f32 %v905_v46, %v883_v44 }
 0x196   :  { %v929_v48 = vadd.f32 %v928_v47, %v906_v9 }
 0x198   :  { %v937_v51 = vmax.f32 %v929_v48, 0.0 }
 0x19a   :  { %1095 = vmatmul.f32.vlgmr.msrb.gmra.mxu3 %v937_v51 }
 0x19b   :  { %v908_v28 = vpop.f32.mrf.mxu2  ;;  %v931_v31 = vpop.f32.mrf.mxu3 }
 0x19c   :  { %v909_v53 = vadd.f32 %v908_v28, %v886_v27 }
 0x19e   :  { %v932_v32 = vadd.f32 %v931_v31, %v909_v53 }
 0x1a0   :  { %v941_v54 = vmax.f32 %v932_v32, 0.0 }
 0x1a2   :  { %1098 = vmatmul.f32.gmra.mxu3 %v941_v54 }
 0x1cc   :  { %v1027_v5 = vpop.f32.mrf.mxu0 }
 0x1cd   :  { %v1028_v11 = vadd.f32 %v1202_v6, %v1027_v5 }
 0x1d6   :  { %v1030_v13 = vpop.f32.mrf.mxu0 }
 0x1d7   :  { %v1031_v16 = vadd.f32 %v1202_v6, %v1030_v13 }
 0x1e0   :  { %v1050_v7 = vpop.f32.mrf.mxu1 }
 0x1e1   :  { %v1051_v12 = vadd.f32 %v1050_v7, %v1028_v11 }
 0x1ea   :  { %v1053_v18 = vpop.f32.mrf.mxu1 }
 0x1eb   :  { %v1054_v21 = vadd.f32 %v1053_v18, %v1031_v16 }
 0x1fc   :  { %v1073_v8 = vpop.f32.mrf.mxu2 }
 0x1fd   :  { %v1074_v14 = vadd.f32 %v1073_v8, %v1051_v12 }
 0x206   :  { %v1076_v20 = vpop.f32.mrf.mxu2 }
 0x207   :  { %v1077_v22 = vadd.f32 %v1076_v20, %v1054_v21 }
 0x21d   :  { %v1096_v15 = vpop.f32.mrf.mxu3 }
 0x21e   :  { %v1097_v17 = vadd.f32 %v1096_v15, %v1074_v14 }
 0x220   :  { %v1102_v19 = vmax.f32 %v1097_v17, 0.0 }
 0x222   :  { %1140 = vmatmul.f32.vlgmr.msra.gmra.mxu0 %v1102_v19 }
 0x225   :  { %v1099_v23 = vpop.f32.mrf.mxu3 }
 0x226   :  { %v1100_v24 = vadd.f32 %v1099_v23, %v1077_v22 }
 0x228   :  { %v1103_v25 = vmax.f32 %v1100_v24, 0.0 }
 0x22a   :  { %1143 = vmatmul.f32.vlgmr.msra.gmra.mxu1 %v1103_v25 }
 0x29f   :  { %v1141_v29 = vpop.f32.mrf.mxu0 }
 0x2a0   :  { %v1142_v30 = vadd.f32 %v1203_v26, %v1141_v29 }
 0x2a2   :  { %1147 = vmax.xlane.f32.xlu0 %v1142_v30 }
 0x2a7   :  { %v1144_v33 = vpop.f32.mrf.mxu1 }
 0x2a8   :  { %v1145_v34 = vadd.f32 %v1203_v26, %v1144_v33 }
 0x2aa   :  { %1149 = vmax.xlane.f32.xlu0 %v1145_v34 }
 0x315   :  { %v1148_v35 = vpop.xlane.xlu0 %1147 }
 0x316   :  { %v1151_v36 = vsub.f32 %v1142_v30, %v1148_v35 }
 0x318   :  { %v1153_v37 = vmul.f32 1.442695, %v1151_v36 }
 0x31a   :  { %1204 = vpow2.f32 %v1153_v37 }
 0x31d   :  { %v1150_v38 = vpop.xlane.xlu0 %1149 }
 0x31e   :  { %v1152_v39 = vsub.f32 %v1145_v34, %v1150_v38 }
 0x320   :  { %v1205_v40 = vpop.eup %1204  ;;  %v1155_v41 = vmul.f32 1.442695, %v1152_v39 }
 0x321   :  { %1157 = vadd.xlane.f32.xlu1 %v1205_v40 }
 0x322   :  { %1206 = vpow2.f32 %v1155_v41 }
 0x328   :  { %v1207_v42 = vpop.eup %1206 }
 0x329   :  { %1159 = vadd.xlane.f32.xlu1 %v1207_v42 }
 0x394   :  { %v1158_v43 = vpop.xlane.xlu1 %1157 }
 0x395   :  { %1208 = vrcp.f32 %v1158_v43 }
 0x39b   :  { %v1209_v44 = vpop.eup %1208 }
 0x39c   :  { %v1163_v45 = vmul.f32 %v1209_v44, %v1205_v40  ;;  %v1160_v46 = vpop.xlane.xlu1 %1159 }
 0x39d   :  { %1210 = vrcp.f32 %v1160_v46 }
 0x39e   :  { %1166 = vst.msk [vmem:[%s1520_s9] sm:$0xff] %vm1165_vm0, %v1163_v45 }
 0x3a3   :  { %v1211_v47 = vpop.eup %1210 }
 0x3a4   :  { %v1164_v9 = vmul.f32 %v1211_v47, %v1207_v42 }
 0x3a6   :  { %1167 = vst.msk [vmem:[%s1520_s9 + $0x8] sm:$0xff] %vm1165_vm0, %v1164_v9 }
 0x3a7   :  { %1172 = vsyncpa [#allocation3], 1 }
 0x3a8   :  { %1173 = vsyncpa [#allocation5], 1 }
 0x3a9   :  { %1174 = vsyncpa [#allocation8], 1 }
 0x3aa   :  { %1175 = vsyncpa [#allocation11], 1 }

</bundles_post_ra>
